<compile_context>
chip_gen: v7x
topology: tpu7x:2x2x1
jax: 0.10.0
libtpu: 0.0.40
codegen_flags: <defaults>
</compile_context>

<pallas_src>
import functools

import jax
import jax.numpy as jnp
from jax.experimental import pallas as pl
from jax.experimental.pallas import tpu as pltpu


def _round_up(x, m):
    return (x + m - 1) // m * m


# --------------------------- VMEM / tiling budgets ---------------------------

_VMEM_LIMIT_CACHE = None


def _vmem_limit_bytes():
    """Generation-aware scoped-VMEM limit: ~half of physical VMEM.

    128 MiB parts (v5e/v6e) -> 64 MiB, 64 MiB parts (v7x) -> 32 MiB.  Falls back
    to 32 MiB if the hardware query is unavailable.
    """
    global _VMEM_LIMIT_CACHE
    if _VMEM_LIMIT_CACHE is None:
        cap = 64 * 1024 * 1024
        try:
            info = pltpu.get_tpu_info()
            for name in ("vmem_capacity_bytes", "vmem_size_bytes", "vmem_bytes"):
                v = getattr(info, name, None)
                if v:
                    cap = int(v)
                    break
        except Exception:
            pass
        _VMEM_LIMIT_CACHE = max(min(cap // 2, 96 * 1024 * 1024), 16 * 1024 * 1024)
    return _VMEM_LIMIT_CACHE


def _default_conv_rows(cin, cout):
    """Flattened rows per conv block from a rough per-row VMEM byte budget."""
    per_row = (2 * cin          # bf16 halo window scratch
               + 2 * 2 * cin    # double-buffered bf16 input blocks
               + 2 * 2 * cout   # double-buffered bf16 output blocks
               + 4 * cout       # f32 accumulator
               + 4 * cin)       # masked-patch temporaries
    rows = (_vmem_limit_bytes() // 3) // max(per_row, 1)
    return int(min(max(rows, 256), 8192))


def _default_pool_rows(c):
    """Flattened *output* rows per pool block from a per-row byte budget."""
    per_row = 2 * (2 * 2 * c) + 2 * (2 * c)   # dbl-buffered bf16 in (2 rows) + out
    rows = (_vmem_limit_bytes() // 4) // max(per_row, 1)
    return int(min(max(rows, 64), 1 << 16))


# ----------------------------- conv3x3 + ReLU -------------------------------

def _conv_core(col_ref, xm_ref, w_ref, b_ref, o_ref, xw_ref, top, bot, *, W, TH):
    """3x3 conv + bias + ReLU for one row block in the flattened layout.

    xw_ref (bf16) layout (rows, Cin lanes), 2-row guards keep staging stores at
    even (packed-pair aligned) sublane offsets:
      [0, 2)                      guard rows (never used unmasked)
      [2, 2+W)                    halo image row above the block (or zeros)
      [2+W, 2+W+M)                the M = TH*W rows of this block
      [2+W+M, 2+2W+M)             halo image row below the block (or zeros)
      [2+2W+M, 2+2W+M+2)          guard rows
    """
    cin = xm_ref.shape[-1]
    cout = o_ref.shape[-1]
    M = TH * W
    cdt = xw_ref.dtype

    zg = jnp.zeros((2, cin), cdt)
    xw_ref[pl.ds(0, 2), :] = zg
    xw_ref[pl.ds(2 + 2 * W + M, 2), :] = zg
    xw_ref[pl.ds(2, W), :] = top
    xw_ref[pl.ds(2 + W, M), :] = xm_ref[...]       # bf16 copy, no cast
    xw_ref[pl.ds(2 + W + M, W), :] = bot

    col = col_ref[...]                 # (M, 1) int32: column index (p mod W)
    keep_l = col != 0                  # rows valid for taps with dw = -1
    keep_r = col != (W - 1)            # rows valid for taps with dw = +1

    # Accumulator initialised with the broadcast bias (hoisted out of the loop).
    acc = jnp.broadcast_to(b_ref[...], (M, cout)).astype(jnp.float32)
    k = 0
    for dh in (-1, 0, 1):
        for dw in (-1, 0, 1):
            start = (dh + 1) * W + dw + 2          # static offset into xw
            patch = xw_ref[pl.ds(start, M), :]     # (M, Cin) bf16, contiguous
            if dw == -1:
                patch = jnp.where(keep_l, patch, jnp.zeros_like(patch))
            elif dw == 1:
                patch = jnp.where(keep_r, patch, jnp.zeros_like(patch))
            acc = acc + jnp.dot(patch, w_ref[k],
                                preferred_element_type=jnp.float32)
            k += 1
    o_ref[...] = jnp.maximum(acc, 0.0).astype(o_ref.dtype)


def _conv_kernel_tiled(col_ref, xm_ref, xt_ref, xb_ref, w_ref, b_ref, o_ref,
                       xw_ref, *, W, TH):
    hb = pl.program_id(1)
    nhb = pl.num_programs(1)
    xt = xt_ref[...]
    xb = xb_ref[...]
    top = jnp.where(hb == 0, jnp.zeros_like(xt), xt)        # zero pad, image top
    bot = jnp.where(hb == nhb - 1, jnp.zeros_like(xb), xb)  # zero pad, image bottom
    _conv_core(col_ref, xm_ref, w_ref, b_ref, o_ref, xw_ref, top, bot, W=W, TH=TH)


def _conv_kernel_single(col_ref, xm_ref, w_ref, b_ref, o_ref, xw_ref, *, W, TH):
    zeros = jnp.zeros((W, xm_ref.shape[-1]), xw_ref.dtype)
    _conv_core(col_ref, xm_ref, w_ref, b_ref, o_ref, xw_ref, zeros, zeros,
               W=W, TH=TH)


def _plan_conv_rows(H, W, target_rows):
    """Pick (rows per block TH, padded row count H_pad) for the conv grid."""
    if H * W <= target_rows:
        return H, H                     # whole image: full-dim block, no pad
    if W % 8 != 0:
        # TODO(synk): W not a multiple of 8 cannot use the W-row halo BlockSpecs;
        #             fall back to a whole-image block (rare in practice).
        return H, H
    th = max(min(target_rows // W, H), 1)
    h_pad = _round_up(H, th)            # tail handled by zero-padded extra rows
    return th, h_pad


def _prep_conv(w_hwio, b):
    """Per-layer weight prep (done once): (3,3,cin,cout) -> (9,cin,cout) bf16."""
    _, _, cin, cout = w_hwio.shape
    w9 = w_hwio.reshape(9, cin, cout).astype(jnp.bfloat16)
    b2 = b.reshape(1, cout).astype(jnp.float32)
    return w9, b2


def conv3x3_relu_flat(x_flat, w9, b2, H, W, *, block_rows=None):
    """3x3 / stride-1 / pad-1 conv + bias + ReLU on flattened bf16 activations.

    x_flat: (N, H*W, Cin) bf16   w9: (9, Cin, Cout) bf16   b2: (1, Cout) f32
    Returns (N, H*W, Cout) bf16.
    """
    N, HW, cin = x_flat.shape
    assert HW == H * W
    _, wcin, cout = w9.shape
    assert wcin == cin

    if block_rows is None:
        block_rows = _default_conv_rows(cin, cout)
    TH, H_pad = _plan_conv_rows(H, W, block_rows)
    if H_pad != H:
        x_flat = jnp.pad(x_flat, ((0, 0), (0, (H_pad - H) * W), (0, 0)))
    n_hb = H_pad // TH
    M = TH * W

    colmod = (jnp.arange(M, dtype=jnp.int32) % W).reshape(M, 1)

    in_specs = [
        pl.BlockSpec((M, 1), lambda n, h: (0, 0)),
        pl.BlockSpec((None, M, cin), lambda n, h: (n, h, 0)),
    ]
    args = [colmod, x_flat]
    if n_hb > 1:
        # One-image-row halo blocks above / below the current row block (the
        # same input array passed again with tiny BlockSpecs; boundary blocks
        # are clamped here and replaced by zeros inside the kernel).
        in_specs += [
            pl.BlockSpec((None, W, cin),
                         lambda n, h: (n, jnp.maximum(h * TH - 1, 0), 0)),
            pl.BlockSpec((None, W, cin),
                         lambda n, h: (n, jnp.minimum(h * TH + TH, H_pad - 1), 0)),
        ]
        args += [x_flat, x_flat]
        kernel = functools.partial(_conv_kernel_tiled, W=W, TH=TH)
    else:
        kernel = functools.partial(_conv_kernel_single, W=W, TH=TH)
    in_specs += [
        pl.BlockSpec((9, cin, cout), lambda n, h: (0, 0, 0)),
        pl.BlockSpec((1, cout), lambda n, h: (0, 0)),
    ]
    args += [w9, b2]

    y = pl.pallas_call(
        kernel,
        out_shape=jax.ShapeDtypeStruct((N, H_pad * W, cout), jnp.bfloat16),
        grid=(N, n_hb),
        in_specs=in_specs,
        out_specs=pl.BlockSpec((None, M, cout), lambda n, h: (n, h, 0)),
        scratch_shapes=[pltpu.VMEM((M + 2 * W + 4, cin), jnp.bfloat16)],
        compiler_params=pltpu.CompilerParams(
            dimension_semantics=("parallel", "parallel"),
            vmem_limit_bytes=_vmem_limit_bytes()),
    )(*args)
    if H_pad != H:
        y = y[:, :HW, :]
    return y


# ------------------------------- max pool 2x2 -------------------------------

def _pool_kernel(x_ref, o_ref, *, Wo, PH):
    """2x2 / stride-2 max pool over PH output image rows.

    x_ref: (2*PH*Wo, 2C) - each row packs two adjacent input columns, so every
    load is contiguous; horizontal reduction is a lane-slice max (no stride-2
    sublane loads, no MXU).
    """
    C = o_ref.shape[-1]
    for r in range(PH):                                # small static unroll
        a = x_ref[pl.ds((2 * r) * Wo, Wo), :]          # input image row 2r
        b = x_ref[pl.ds((2 * r + 1) * Wo, Wo), :]      # input image row 2r+1
        v = jnp.maximum(a, b)                          # vertical max, (Wo, 2C)
        o_ref[pl.ds(r * Wo, Wo), :] = jnp.maximum(v[:, :C], v[:, C:])


def _pick_pool_rows(Ho, Wo, target_rows, max_unroll=8):
    if Ho <= max_unroll and Ho * Wo <= target_rows:
        return Ho
    for ph in range(min(Ho, max_unroll), 0, -1):
        if Ho % ph:
            continue
        if ph * Wo > target_rows:
            continue
        if (ph * Wo) % 8:
            continue
        return ph
    return Ho       # whole image (full-dim block)


def maxpool2x2_flat(x_flat, H, W, *, block_rows=None):
    """x_flat: (N, H*W, C) bf16 -> (N, (H//2)*(W//2), C) bf16."""
    N, HW, C = x_flat.shape
    assert HW == H * W
    # TODO(synk): odd H/W (PyTorch MaxPool2d floor mode) is not supported in the
    #             flattened layout; the encoder is used with even spatial sizes.
    assert H % 2 == 0 and W % 2 == 0
    Ho, Wo = H // 2, W // 2
    if block_rows is None:
        block_rows = _default_pool_rows(C)
    PH = _pick_pool_rows(Ho, Wo, block_rows)
    n_pb = Ho // PH

    # Free contiguous reinterpretation: pack adjacent column pairs into lanes.
    xp = x_flat.reshape(N, HW // 2, 2 * C)

    return pl.pallas_call(
        functools.partial(_pool_kernel, Wo=Wo, PH=PH),
        out_shape=jax.ShapeDtypeStruct((N, Ho * Wo, C), x_flat.dtype),
        grid=(N, n_pb),
        in_specs=[pl.BlockSpec((None, 2 * PH * Wo, 2 * C), lambda n, p: (n, p, 0))],
        out_specs=pl.BlockSpec((None, PH * Wo, C), lambda n, p: (n, p, 0)),
        compiler_params=pltpu.CompilerParams(
            dimension_semantics=("parallel", "parallel"),
            vmem_limit_bytes=_vmem_limit_bytes()),
    )(xp)


# ------------------------------ encoder driver ------------------------------

def _encoder_flat(x_flat, H, W, prepped, conv_block_rows, pool_block_rows):
    feats = []   # list of (flat bf16 activation, H, W)
    (w0, b0), = prepped[0]
    y = conv3x3_relu_flat(x_flat, w0, b0, H, W, block_rows=conv_block_rows)
    feats.append((y, H, W))
    for stage in prepped[1:]:
        y = maxpool2x2_flat(y, H, W, block_rows=pool_block_rows)
        H, W = H // 2, W // 2
        for (w, b) in stage:
            y = conv3x3_relu_flat(y, w, b, H, W, block_rows=conv_block_rows)
        feats.append((y, H, W))
    y = maxpool2x2_flat(y, H, W, block_rows=pool_block_rows)
    H, W = H // 2, W // 2
    feats.append((y, H, W))
    return feats


def unet_encoder(x_nchw, params, *, conv_block_rows=None, pool_block_rows=None):
    """Pallas UNetEncoder forward.  NCHW f32 in / NCHW f32 features out (the
    PyTorch module's convention); internally everything runs as flattened,
    lane-dense bf16 and is converted only at the interface."""
    N, Cin, H, W = x_nchw.shape
    # Weights prepared once (reshape + bf16 cast), outside the per-layer calls.
    prepped = [[_prep_conv(w, b) for (w, b) in stage] for stage in params]
    x = (jnp.transpose(x_nchw, (0, 2, 3, 1))
         .astype(jnp.bfloat16).reshape(N, H * W, Cin))
    feats = _encoder_flat(x, H, W, prepped, conv_block_rows, pool_block_rows)
    out = []
    for (f, h, w) in feats:
        f = f.astype(jnp.float32).reshape(N, h, w, f.shape[-1])
        out.append(jnp.transpose(f, (0, 3, 1, 2)))   # NHWC -> NCHW (interface only)
    return out


# ------------------------- pure-JAX reference (check) -----------------------

def _conv3x3_relu_ref(x, w, b):
    y = jax.lax.conv_general_dilated(
        x, w, window_strides=(1, 1), padding=((1, 1), (1, 1)),
        dimension_numbers=("NHWC", "HWIO", "NHWC"))
    return jnp.maximum(y + b.reshape(1, 1, 1, -1), 0.0)


def _maxpool2x2_ref(x):
    return jax.lax.reduce_window(x, -jnp.inf, jax.lax.max,
                                 (1, 2, 2, 1), (1, 2, 2, 1), "VALID")


def unet_encoder_ref(x_nchw, params):
    x = jnp.transpose(x_nchw, (0, 2, 3, 1)).astype(jnp.float32)
    feats = []
    (w0, b0), = params[0]
    x = _conv3x3_relu_ref(x, w0, b0)
    feats.append(x)
    for stage_params in params[1:]:
        x = _maxpool2x2_ref(x)
        for (w, b) in stage_params:
            x = _conv3x3_relu_ref(x, w, b)
        feats.append(x)
    x = _maxpool2x2_ref(x)
    feats.append(x)
    return [jnp.transpose(f, (0, 3, 1, 2)) for f in feats]


# ------------------------------- parameters --------------------------------

def init_params(key, in_channels, channels):
    """Deterministic synthetic weights matching the nn.Module's conv shapes."""
    def conv_init(k, cin, cout):
        kw, kb = jax.random.split(k)
        w = jax.random.normal(kw, (3, 3, cin, cout), jnp.float32) * ((9 * cin) ** -0.5)
        b = jax.random.normal(kb, (cout,), jnp.float32) * 0.01
        return w, b

    params = []
    k = key
    k, sub = jax.random.split(k)
    params.append([conv_init(sub, in_channels, channels[0])])            # stage 0
    for i in range(len(channels) - 1):
        k, s1, s2 = jax.random.split(k, 3)
        params.append([conv_init(s1, channels[i], channels[i + 1]),
                       conv_init(s2, channels[i + 1], channels[i + 1])])  # pooled stages
    return params


# ----------------------------------- main -----------------------------------

if __name__ == "__main__":
    # small shapes: batch=2, in_channels=4, spatial=16x16, channels=(8,16,32)
    N, CIN, H, W = 2, 4, 16, 16
    CHANNELS = (8, 16, 32)

    x = jax.random.normal(jax.random.PRNGKey(0), (N, CIN, H, W), dtype=jnp.float32)
    params = init_params(jax.random.PRNGKey(1), CIN, CHANNELS)

    # Small row-block budgets so the H-tiled (halo) conv path and the tiled pool
    # path both get exercised even at these tiny test shapes.
    feats = unet_encoder(x, params, conv_block_rows=128, pool_block_rows=32)
    feats = [jax.block_until_ready(f) for f in feats]

    ref_feats = unet_encoder_ref(x, params)
    assert len(feats) == len(CHANNELS) + 1
    for got, ref in zip(feats, ref_feats):
        assert got.shape == ref.shape, (got.shape, ref.shape)
        err = float(jnp.max(jnp.abs(got - ref)))
        # bf16 activations + bf16 MXU inputs vs. the f32 reference => loose tol.
        assert bool(jnp.allclose(got, ref, atol=1e-1, rtol=1e-1)), err

    print("KERNEL_OK")
</pallas_src>

<mosaic_0001>
module attributes {stable_mosaic.version = 11 : i64} {
  func.func @_conv_kernel_tiled(%arg0: i32, %arg1: i32, %arg2: memref<128x1xi32, #tpu.memory_space<vmem>>, %arg3: memref<1x128x4xbf16, #tpu.memory_space<vmem>>, %arg4: memref<1x16x4xbf16, #tpu.memory_space<vmem>>, %arg5: memref<1x16x4xbf16, #tpu.memory_space<vmem>>, %arg6: memref<9x4x8xbf16, #tpu.memory_space<vmem>>, %arg7: memref<1x8xf32, #tpu.memory_space<vmem>>, %arg8: memref<1x128x8xbf16, #tpu.memory_space<vmem>>, %arg9: memref<164x4xbf16, #tpu.memory_space<vmem>>) attributes {dimension_semantics = [#tpu.dimension_semantics<parallel>, #tpu.dimension_semantics<parallel>], iteration_bounds = array<i64: 2, 2>, scalar_prefetch = 0 : i64, scratch_operands = 1 : i64, tpu.core_type = #tpu.core_type<tc>, window_params = [{pipeline_mode = #tpu.pipeline_mode<synchronous>, transform_indices = @transform_0, window_bounds = array<i64: 128, 1>}, {transform_indices = @transform_1, window_bounds = array<i64: 1, 128, 4>}, {transform_indices = @transform_2, window_bounds = array<i64: 1, 16, 4>}, {transform_indices = @transform_3, window_bounds = array<i64: 1, 16, 4>}, {pipeline_mode = #tpu.pipeline_mode<synchronous>, transform_indices = @transform_4, window_bounds = array<i64: 9, 4, 8>}, {pipeline_mode = #tpu.pipeline_mode<synchronous>, transform_indices = @transform_5, window_bounds = array<i64: 1, 8>}, {transform_indices = @transform_6, window_bounds = array<i64: 1, 128, 8>}]} {
    %c0 = arith.constant 0 : index
    %c0_0 = arith.constant 0 : index
    %c0_1 = arith.constant 0 : index
    %0 = vector.load %arg4[%c0, %c0_0, %c0_1] : memref<1x16x4xbf16, #tpu.memory_space<vmem>>, vector<1x16x4xbf16>
    %1 = vector.shape_cast %0 : vector<1x16x4xbf16> to vector<16x4xbf16>
    %c0_2 = arith.constant 0 : index
    %c0_3 = arith.constant 0 : index
    %c0_4 = arith.constant 0 : index
    %2 = vector.load %arg5[%c0_2, %c0_3, %c0_4] : memref<1x16x4xbf16, #tpu.memory_space<vmem>>, vector<1x16x4xbf16>
    %3 = vector.shape_cast %2 : vector<1x16x4xbf16> to vector<16x4xbf16>
    %c0_i32 = arith.constant 0 : i32
    %4 = arith.cmpi eq, %arg1, %c0_i32 : i32
    %cst = arith.constant 0.000000e+00 : bf16
    %5 = vector.broadcast %cst : bf16 to vector<16x4xbf16>
    %6 = arith.select %4, %5, %1 : vector<16x4xbf16>
    %c1_i32 = arith.constant 1 : i32
    %7 = arith.cmpi eq, %arg1, %c1_i32 : i32
    %cst_5 = arith.constant 0.000000e+00 : bf16
    %8 = vector.broadcast %cst_5 : bf16 to vector<16x4xbf16>
    %9 = arith.select %7, %8, %3 : vector<16x4xbf16>
    %cst_6 = arith.constant 0.000000e+00 : bf16
    %10 = vector.broadcast %cst_6 : bf16 to vector<2x4xbf16>
    %c0_7 = arith.constant 0 : index
    %c0_8 = arith.constant 0 : index
    %11 = vector.load %arg9[%c0_7, %c0_8] : memref<164x4xbf16, #tpu.memory_space<vmem>>, vector<2x4xbf16>
    tpu.vector_store %arg9[%c0_7, %c0_8], %10 {strides = array<i32>} : memref<164x4xbf16, #tpu.memory_space<vmem>>, vector<2x4xbf16>,
    %c162 = arith.constant 162 : index
    %c0_9 = arith.constant 0 : index
    %12 = vector.load %arg9[%c162, %c0_9] : memref<164x4xbf16, #tpu.memory_space<vmem>>, vector<2x4xbf16>
    tpu.vector_store %arg9[%c162, %c0_9], %10 {strides = array<i32>} : memref<164x4xbf16, #tpu.memory_space<vmem>>, vector<2x4xbf16>,
    %c2 = arith.constant 2 : index
    %c0_10 = arith.constant 0 : index
    %13 = vector.load %arg9[%c2, %c0_10] : memref<164x4xbf16, #tpu.memory_space<vmem>>, vector<16x4xbf16>
    tpu.vector_store %arg9[%c2, %c0_10], %6 {strides = array<i32>} : memref<164x4xbf16, #tpu.memory_space<vmem>>, vector<16x4xbf16>,
    %c0_11 = arith.constant 0 : index
    %c0_12 = arith.constant 0 : index
    %c0_13 = arith.constant 0 : index
    %14 = vector.load %arg3[%c0_11, %c0_12, %c0_13] : memref<1x128x4xbf16, #tpu.memory_space<vmem>>, vector<1x128x4xbf16>
    %15 = vector.shape_cast %14 : vector<1x128x4xbf16> to vector<128x4xbf16>
    %c18 = arith.constant 18 : index
    %c0_14 = arith.constant 0 : index
    %16 = vector.load %arg9[%c18, %c0_14] : memref<164x4xbf16, #tpu.memory_space<vmem>>, vector<128x4xbf16>
    tpu.vector_store %arg9[%c18, %c0_14], %15 {strides = array<i32>} : memref<164x4xbf16, #tpu.memory_space<vmem>>, vector<128x4xbf16>,
    %c146 = arith.constant 146 : index
    %c0_15 = arith.constant 0 : index
    %17 = vector.load %arg9[%c146, %c0_15] : memref<164x4xbf16, #tpu.memory_space<vmem>>, vector<16x4xbf16>
    tpu.vector_store %arg9[%c146, %c0_15], %9 {strides = array<i32>} : memref<164x4xbf16, #tpu.memory_space<vmem>>, vector<16x4xbf16>,
    %c0_16 = arith.constant 0 : index
    %c0_17 = arith.constant 0 : index
    %18 = vector.load %arg2[%c0_16, %c0_17] : memref<128x1xi32, #tpu.memory_space<vmem>>, vector<128x1xi32>
    %c0_i32_18 = arith.constant 0 : i32
    %19 = vector.broadcast %c0_i32_18 : i32 to vector<128x1xi32>
    %20 = arith.cmpi ne, %18, %19 : vector<128x1xi32>
    %c15_i32 = arith.constant 15 : i32
    %21 = vector.broadcast %c15_i32 : i32 to vector<128x1xi32>
    %22 = arith.cmpi ne, %18, %21 : vector<128x1xi32>
    %c0_19 = arith.constant 0 : index
    %c0_20 = arith.constant 0 : index
    %23 = vector.load %arg7[%c0_19, %c0_20] : memref<1x8xf32, #tpu.memory_space<vmem>>, vector<1x8xf32>
    %24 = vector.shape_cast %23 : vector<1x8xf32> to vector<1x8xf32>
    %25 = vector.broadcast %24 : vector<1x8xf32> to vector<128x8xf32>
    %c1 = arith.constant 1 : index
    %c0_21 = arith.constant 0 : index
    %26 = vector.load %arg9[%c1, %c0_21] : memref<164x4xbf16, #tpu.memory_space<vmem>>, vector<128x4xbf16>
    %cst_22 = arith.constant 0.000000e+00 : bf16
    %27 = vector.broadcast %cst_22 : bf16 to vector<128x4xbf16>
    %28 = vector.shape_cast %20 : vector<128x1xi1> to vector<128x1xi1>
    %29 = vector.broadcast %28 : vector<128x1xi1> to vector<128x4xi1>
    %30 = arith.select %29, %26, %27 : vector<128x4xi1>, vector<128x4xbf16>
    %c0_23 = arith.constant 0 : index
    %c0_24 = arith.constant 0 : index
    %c0_25 = arith.constant 0 : index
    %31 = vector.load %arg6[%c0_23, %c0_24, %c0_25] : memref<9x4x8xbf16, #tpu.memory_space<vmem>>, vector<1x4x8xbf16>
    %32 = vector.shape_cast %31 : vector<1x4x8xbf16> to vector<4x8xbf16>
    %cst_26 = arith.constant dense<0.000000e+00> : vector<128x8xf32>
    %33 = tpu.matmul %30, %32, %cst_26 {dimension_numbers = #tpu.dot_dimension_numbers<[1], [0], [0], [1], [0, 0, 1, 1], [], []>} : vector<128x4xbf16>, vector<4x8xbf16>, vector<128x8xf32> -> vector<128x8xf32>
    %34 = arith.addf %25, %33 : vector<128x8xf32>
    %c2_27 = arith.constant 2 : index
    %c0_28 = arith.constant 0 : index
    %35 = vector.load %arg9[%c2_27, %c0_28] : memref<164x4xbf16, #tpu.memory_space<vmem>>, vector<128x4xbf16>
    %c1_29 = arith.constant 1 : index
    %c0_30 = arith.constant 0 : index
    %c0_31 = arith.constant 0 : index
    %36 = vector.load %arg6[%c1_29, %c0_30, %c0_31] : memref<9x4x8xbf16, #tpu.memory_space<vmem>>, vector<1x4x8xbf16>
    %37 = vector.shape_cast %36 : vector<1x4x8xbf16> to vector<4x8xbf16>
    %cst_32 = arith.constant dense<0.000000e+00> : vector<128x8xf32>
    %38 = tpu.matmul %35, %37, %cst_32 {dimension_numbers = #tpu.dot_dimension_numbers<[1], [0], [0], [1], [0, 0, 1, 1], [], []>} : vector<128x4xbf16>, vector<4x8xbf16>, vector<128x8xf32> -> vector<128x8xf32>
    %39 = arith.addf %34, %38 : vector<128x8xf32>
    %c3 = arith.constant 3 : index
    %c0_33 = arith.constant 0 : index
    %40 = vector.load %arg9[%c3, %c0_33] : memref<164x4xbf16, #tpu.memory_space<vmem>>, vector<128x4xbf16>
    %cst_34 = arith.constant 0.000000e+00 : bf16
    %41 = vector.broadcast %cst_34 : bf16 to vector<128x4xbf16>
    %42 = vector.shape_cast %22 : vector<128x1xi1> to vector<128x1xi1>
    %43 = vector.broadcast %42 : vector<128x1xi1> to vector<128x4xi1>
    %44 = arith.select %43, %40, %41 : vector<128x4xi1>, vector<128x4xbf16>
    %c2_35 = arith.constant 2 : index
    %c0_36 = arith.constant 0 : index
    %c0_37 = arith.constant 0 : index
    %45 = vector.load %arg6[%c2_35, %c0_36, %c0_37] : memref<9x4x8xbf16, #tpu.memory_space<vmem>>, vector<1x4x8xbf16>
    %46 = vector.shape_cast %45 : vector<1x4x8xbf16> to vector<4x8xbf16>
    %cst_38 = arith.constant dense<0.000000e+00> : vector<128x8xf32>
    %47 = tpu.matmul %44, %46, %cst_38 {dimension_numbers = #tpu.dot_dimension_numbers<[1], [0], [0], [1], [0, 0, 1, 1], [], []>} : vector<128x4xbf16>, vector<4x8xbf16>, vector<128x8xf32> -> vector<128x8xf32>
    %48 = arith.addf %39, %47 : vector<128x8xf32>
    %c17 = arith.constant 17 : index
    %c0_39 = arith.constant 0 : index
    %49 = vector.load %arg9[%c17, %c0_39] : memref<164x4xbf16, #tpu.memory_space<vmem>>, vector<128x4xbf16>
    %cst_40 = arith.constant 0.000000e+00 : bf16
    %50 = vector.broadcast %cst_40 : bf16 to vector<128x4xbf16>
    %51 = vector.shape_cast %20 : vector<128x1xi1> to vector<128x1xi1>
    %52 = vector.broadcast %51 : vector<128x1xi1> to vector<128x4xi1>
    %53 = arith.select %52, %49, %50 : vector<128x4xi1>, vector<128x4xbf16>
    %c3_41 = arith.constant 3 : index
    %c0_42 = arith.constant 0 : index
    %c0_43 = arith.constant 0 : index
    %54 = vector.load %arg6[%c3_41, %c0_42, %c0_43] : memref<9x4x8xbf16, #tpu.memory_space<vmem>>, vector<1x4x8xbf16>
    %55 = vector.shape_cast %54 : vector<1x4x8xbf16> to vector<4x8xbf16>
    %cst_44 = arith.constant dense<0.000000e+00> : vector<128x8xf32>
    %56 = tpu.matmul %53, %55, %cst_44 {dimension_numbers = #tpu.dot_dimension_numbers<[1], [0], [0], [1], [0, 0, 1, 1], [], []>} : vector<128x4xbf16>, vector<4x8xbf16>, vector<128x8xf32> -> vector<128x8xf32>
    %57 = arith.addf %48, %56 : vector<128x8xf32>
    %c18_45 = arith.constant 18 : index
    %c0_46 = arith.constant 0 : index
    %58 = vector.load %arg9[%c18_45, %c0_46] : memref<164x4xbf16, #tpu.memory_space<vmem>>, vector<128x4xbf16>
    %c4 = arith.constant 4 : index
    %c0_47 = arith.constant 0 : index
    %c0_48 = arith.constant 0 : index
    %59 = vector.load %arg6[%c4, %c0_47, %c0_48] : memref<9x4x8xbf16, #tpu.memory_space<vmem>>, vector<1x4x8xbf16>
    %60 = vector.shape_cast %59 : vector<1x4x8xbf16> to vector<4x8xbf16>
    %cst_49 = arith.constant dense<0.000000e+00> : vector<128x8xf32>
    %61 = tpu.matmul %58, %60, %cst_49 {dimension_numbers = #tpu.dot_dimension_numbers<[1], [0], [0], [1], [0, 0, 1, 1], [], []>} : vector<128x4xbf16>, vector<4x8xbf16>, vector<128x8xf32> -> vector<128x8xf32>
    %62 = arith.addf %57, %61 : vector<128x8xf32>
    %c19 = arith.constant 19 : index
    %c0_50 = arith.constant 0 : index
    %63 = vector.load %arg9[%c19, %c0_50] : memref<164x4xbf16, #tpu.memory_space<vmem>>, vector<128x4xbf16>
    %cst_51 = arith.constant 0.000000e+00 : bf16
    %64 = vector.broadcast %cst_51 : bf16 to vector<128x4xbf16>
    %65 = vector.shape_cast %22 : vector<128x1xi1> to vector<128x1xi1>
    %66 = vector.broadcast %65 : vector<128x1xi1> to vector<128x4xi1>
    %67 = arith.select %66, %63, %64 : vector<128x4xi1>, vector<128x4xbf16>
    %c5 = arith.constant 5 : index
    %c0_52 = arith.constant 0 : index
    %c0_53 = arith.constant 0 : index
    %68 = vector.load %arg6[%c5, %c0_52, %c0_53] : memref<9x4x8xbf16, #tpu.memory_space<vmem>>, vector<1x4x8xbf16>
    %69 = vector.shape_cast %68 : vector<1x4x8xbf16> to vector<4x8xbf16>
    %cst_54 = arith.constant dense<0.000000e+00> : vector<128x8xf32>
    %70 = tpu.matmul %67, %69, %cst_54 {dimension_numbers = #tpu.dot_dimension_numbers<[1], [0], [0], [1], [0, 0, 1, 1], [], []>} : vector<128x4xbf16>, vector<4x8xbf16>, vector<128x8xf32> -> vector<128x8xf32>
    %71 = arith.addf %62, %70 : vector<128x8xf32>
    %c33 = arith.constant 33 : index
    %c0_55 = arith.constant 0 : index
    %72 = vector.load %arg9[%c33, %c0_55] : memref<164x4xbf16, #tpu.memory_space<vmem>>, vector<128x4xbf16>
    %cst_56 = arith.constant 0.000000e+00 : bf16
    %73 = vector.broadcast %cst_56 : bf16 to vector<128x4xbf16>
    %74 = vector.shape_cast %20 : vector<128x1xi1> to vector<128x1xi1>
    %75 = vector.broadcast %74 : vector<128x1xi1> to vector<128x4xi1>
    %76 = arith.select %75, %72, %73 : vector<128x4xi1>, vector<128x4xbf16>
    %c6 = arith.constant 6 : index
    %c0_57 = arith.constant 0 : index
    %c0_58 = arith.constant 0 : index
    %77 = vector.load %arg6[%c6, %c0_57, %c0_58] : memref<9x4x8xbf16, #tpu.memory_space<vmem>>, vector<1x4x8xbf16>
    %78 = vector.shape_cast %77 : vector<1x4x8xbf16> to vector<4x8xbf16>
    %cst_59 = arith.constant dense<0.000000e+00> : vector<128x8xf32>
    %79 = tpu.matmul %76, %78, %cst_59 {dimension_numbers = #tpu.dot_dimension_numbers<[1], [0], [0], [1], [0, 0, 1, 1], [], []>} : vector<128x4xbf16>, vector<4x8xbf16>, vector<128x8xf32> -> vector<128x8xf32>
    %80 = arith.addf %71, %79 : vector<128x8xf32>
    %c34 = arith.constant 34 : index
    %c0_60 = arith.constant 0 : index
    %81 = vector.load %arg9[%c34, %c0_60] : memref<164x4xbf16, #tpu.memory_space<vmem>>, vector<128x4xbf16>
    %c7 = arith.constant 7 : index
    %c0_61 = arith.constant 0 : index
    %c0_62 = arith.constant 0 : index
    %82 = vector.load %arg6[%c7, %c0_61, %c0_62] : memref<9x4x8xbf16, #tpu.memory_space<vmem>>, vector<1x4x8xbf16>
    %83 = vector.shape_cast %82 : vector<1x4x8xbf16> to vector<4x8xbf16>
    %cst_63 = arith.constant dense<0.000000e+00> : vector<128x8xf32>
    %84 = tpu.matmul %81, %83, %cst_63 {dimension_numbers = #tpu.dot_dimension_numbers<[1], [0], [0], [1], [0, 0, 1, 1], [], []>} : vector<128x4xbf16>, vector<4x8xbf16>, vector<128x8xf32> -> vector<128x8xf32>
    %85 = arith.addf %80, %84 : vector<128x8xf32>
    %c35 = arith.constant 35 : index
    %c0_64 = arith.constant 0 : index
    %86 = vector.load %arg9[%c35, %c0_64] : memref<164x4xbf16, #tpu.memory_space<vmem>>, vector<128x4xbf16>
    %cst_65 = arith.constant 0.000000e+00 : bf16
    %87 = vector.broadcast %cst_65 : bf16 to vector<128x4xbf16>
    %88 = vector.shape_cast %22 : vector<128x1xi1> to vector<128x1xi1>
    %89 = vector.broadcast %88 : vector<128x1xi1> to vector<128x4xi1>
    %90 = arith.select %89, %86, %87 : vector<128x4xi1>, vector<128x4xbf16>
    %c8 = arith.constant 8 : index
    %c0_66 = arith.constant 0 : index
    %c0_67 = arith.constant 0 : index
    %91 = vector.load %arg6[%c8, %c0_66, %c0_67] : memref<9x4x8xbf16, #tpu.memory_space<vmem>>, vector<1x4x8xbf16>
    %92 = vector.shape_cast %91 : vector<1x4x8xbf16> to vector<4x8xbf16>
    %cst_68 = arith.constant dense<0.000000e+00> : vector<128x8xf32>
    %93 = tpu.matmul %90, %92, %cst_68 {dimension_numbers = #tpu.dot_dimension_numbers<[1], [0], [0], [1], [0, 0, 1, 1], [], []>} : vector<128x4xbf16>, vector<4x8xbf16>, vector<128x8xf32> -> vector<128x8xf32>
    %94 = arith.addf %85, %93 : vector<128x8xf32>
    %cst_69 = arith.constant 0.000000e+00 : f32
    %95 = vector.broadcast %cst_69 : f32 to vector<128x8xf32>
    %96 = arith.maximumf %94, %95 : vector<128x8xf32>
    %97 = arith.truncf %96 : vector<128x8xf32> to vector<128x8xbf16>
    %c0_70 = arith.constant 0 : index
    %c0_71 = arith.constant 0 : index
    %c0_72 = arith.constant 0 : index
    %98 = vector.load %arg8[%c0_70, %c0_71, %c0_72] : memref<1x128x8xbf16, #tpu.memory_space<vmem>>, vector<1x128x8xbf16>
    %99 = vector.shape_cast %98 : vector<1x128x8xbf16> to vector<128x8xbf16>
    %100 = vector.shape_cast %97 : vector<128x8xbf16> to vector<1x128x8xbf16>
    tpu.vector_store %arg8[%c0_70, %c0_71, %c0_72], %100 {strides = array<i32>} : memref<1x128x8xbf16, #tpu.memory_space<vmem>>, vector<1x128x8xbf16>,
    return
  }
  func.func @transform_0(%arg0: i32, %arg1: i32) -> (i32, i32) {
    %c0_i32 = arith.constant 0 : i32
    %c0_i32_0 = arith.constant 0 : i32
    %c0_i32_1 = arith.constant 0 : i32
    return %c0_i32, %c0_i32_0 : i32, i32
  }
  func.func @transform_1(%arg0: i32, %arg1: i32) -> (i32, i32, i32) {
    %c0_i32 = arith.constant 0 : i32
    %c0_i32_0 = arith.constant 0 : i32
    return %arg0, %arg1, %c0_i32 : i32, i32, i32
  }
  func.func @transform_2(%arg0: i32, %arg1: i32) -> (i32, i32, i32) {
    %c8_i32 = arith.constant 8 : i32
    %0 = arith.muli %arg1, %c8_i32 : i32
    %c1_i32 = arith.constant 1 : i32
    %1 = arith.subi %0, %c1_i32 : i32
    %c0_i32 = arith.constant 0 : i32
    %2 = arith.maxsi %1, %c0_i32 : i32
    %c0_i32_0 = arith.constant 0 : i32
    %c0_i32_1 = arith.constant 0 : i32
    return %arg0, %2, %c0_i32_0 : i32, i32, i32
  }
  func.func @transform_3(%arg0: i32, %arg1: i32) -> (i32, i32, i32) {
    %c8_i32 = arith.constant 8 : i32
    %0 = arith.muli %arg1, %c8_i32 : i32
    %c8_i32_0 = arith.constant 8 : i32
    %1 = arith.addi %0, %c8_i32_0 : i32
    %c15_i32 = arith.constant 15 : i32
    %2 = arith.minsi %1, %c15_i32 : i32
    %c0_i32 = arith.constant 0 : i32
    %c0_i32_1 = arith.constant 0 : i32
    return %arg0, %2, %c0_i32 : i32, i32, i32
  }
  func.func @transform_4(%arg0: i32, %arg1: i32) -> (i32, i32, i32) {
    %c0_i32 = arith.constant 0 : i32
    %c0_i32_0 = arith.constant 0 : i32
    %c0_i32_1 = arith.constant 0 : i32
    %c0_i32_2 = arith.constant 0 : i32
    return %c0_i32, %c0_i32_0, %c0_i32_1 : i32, i32, i32
  }
  func.func @transform_5(%arg0: i32, %arg1: i32) -> (i32, i32) {
    %c0_i32 = arith.constant 0 : i32
    %c0_i32_0 = arith.constant 0 : i32
    %c0_i32_1 = arith.constant 0 : i32
    return %c0_i32, %c0_i32_0 : i32, i32
  }
  func.func @transform_6(%arg0: i32, %arg1: i32) -> (i32, i32, i32) {
    %c0_i32 = arith.constant 0 : i32
    %c0_i32_0 = arith.constant 0 : i32
    return %arg0, %arg1, %c0_i32 : i32, i32, i32
  }
}

</mosaic_0001>

<bundles_post_ra>
// kernel: tpu_custom_call.1
= control target key start
LH: loop header
LB: loop body
LE: loop exit
PB: predicated region body
PF: predicated region fallthrough
CT: control target
= control target key end

     0   :  { %s4511_s21 = smov 0   ;;  %s4513_s22 = smov 0   ;;  %s6124_s0 = inlined_call_operand.vmem [shape: s32[128,1], index: 0, kind: input, shape index: {}]   ;;  %s6125_s1 = inlined_call_operand.vmem [shape: bf16[2,256,4], index: 1, kind: input, shape index: {}]   ;;  %s6126_s2 = inlined_call_operand.vmem [shape: bf16[2,256,4], index: 2, kind: input, shape index: {}]   ;;  %s6127_s3 = inlined_call_operand.vmem [shape: bf16[2,256,4], index: 3, kind: input, shape index: {}]   ;;  %s6128_s4 = inlined_call_operand.vmem [shape: bf16[9,4,8], index: 4, kind: input, shape index: {}]   ;;  %s6129_s5 = inlined_call_operand.vmem [shape: f32[1,8], index: 5, kind: input, shape index: {}]   ;;  %s6130_s6 = inlined_call_operand.vmem [shape: bf16[2,256,8], index: 6, kind: output, shape index: {}]  }
   0x1   :  { %s4515_s23 = smov 0   ;;  %s4517_s24 = smov 0  }
   0x2   :  { %s4519_s25 = smov 0  }
   0x3 LB: > { %s25_s26 = sadd.s32 1, %s4465_s23  ;;  %s28_s27 = sadd.s32 1, %s4469_s24  ;;  %s4473_s25 = sphi %s4519_s25, %s16_s25   ;;  %s4469_s24 = sphi %s4517_s24, %s6448_s24   ;;  %s4465_s23 = sphi %s4515_s23, %s6447_s23   ;;  %s4461_s22 = sphi %s4513_s22, %s6446_s22   ;;  %s4457_s21 = sphi %s4511_s21, %s6445_s21  }
   0x4   : > { %p26_p0 = scmp.ge.s32.totalorder %s25_s26, 2  ;;  %p3763_p1 = scmp.ge.s32.totalorder %s4473_s25, 1 }
   0x5   : > { %p299_p2 = scmp.lt.s32.totalorder %s4473_s25, 5 }
   0x6   : > { %s6450_s26 = smov (%p26_p0, %s25_s26), 0  ;;  %s6452_s27 = smov (!%p26_p0, %s28_s27), %s4469_s24 }
   0x7   : > { %p300_p3 = pnand %p3763_p1, %p299_p2  ;;  %p30_p4 = scmp.ge.s32.totalorder %s6452_s27, 2 }
   0x9   : > { %s6454_s27 = smov (%p30_p4, %s6452_s27), 0  ;;  %303 = sbr.rel (%p300_p3) target bundleno = 616 (0x268), region = 44 }
  0x10   : > { %v4548_v0 = vld [vmem:[%s6124_s0 + $0x10] sm:$0xff]  ;;  %v4553_v1 = vld [vmem:[%s6124_s0] sm:$0xff]  ;;  %v4558_v2 = vld [vmem:[%s6124_s0 + $0x18] sm:$0xff]  ;;  %v6133_v3 = vmov 0   ;;  %p364_p5 = scmp.lt.s32.totalorder %s4461_s22, 1  ;;  %s3764_s16 = sshll.u32 %s4457_s21, 4 }
  0x11   : > { %4416 = vset.pattern.permute.xlu1 %v6133_v3  ;;  %4415 = vset.pattern.permute.xlu0 %v6133_v3  ;;  %vm604_vm0 = vcmp.ne.s32.totalorder %v4548_v0, 0  ;;  %vm602_vm1 = vcmp.ne.s32.totalorder %v4553_v1, 0  ;;  %vm605_vm2 = vcmp.ne.s32.totalorder %v4558_v2, 0  ;;  %v587_v4 = vld [vmem:[%s6124_s0 + $0x8] sm:$0xff]  ;;  %v4578_v8 = vld [vmem:[%s6124_s0 + $0x20] sm:$0xff]  ;;  %v4589_v11 = vld [vmem:[%s6124_s0 + $0x38] sm:$0xff] }
  0x12   : > { %v660_v5 = vsel %vm604_vm0, 1, %v6133_v3  ;;  %v658_v6 = vsel %vm602_vm1, 1, %v6133_v3  ;;  %vm603_vm3 = vcmp.ne.s32.totalorder %v587_v4, 0  ;;  %v4573_v7 = vld [vmem:[%s6124_s0 + $0x28] sm:$0xff]  ;;  %v661_v9 = vsel %vm605_vm2, 1, %v6133_v3  ;;  %v4594_v12 = vld [vmem:[%s6124_s0 + $0x30] sm:$0xff] }
  0x13   : > { %681 = vperm.xlu1 %4416, %v660_v5   ;;  %675 = vperm.xlu0 %4415, %v658_v6   ;;  %v659_v10 = vsel %vm603_vm3, 1, %v6133_v3  ;;  %vm607_vm4 = vcmp.ne.s32.totalorder %v4573_v7, 0  ;;  %vm606_vm5 = vcmp.ne.s32.totalorder %v4578_v8, 0  ;;  %s6456_s22 = smov (!%p364_p5, %s4461_s22), 1  ;;  %p366_p6 = scmp.lt.s32.totalorder %s3764_s16, 31  ;;  %vm609_vm6 = vcmp.ne.s32.totalorder %v4589_v11, 0 }
  0x14   : > { %v663_v13 = vsel %vm607_vm4, 1, %v6133_v3  ;;  %v662_v14 = vsel %vm606_vm5, 1, %v6133_v3  ;;  %s3767_s28 = sshll.u32 %s4457_s21, 3  ;;  %vm608_vm7 = vcmp.ne.s32.totalorder %v4594_v12, 0  ;;  %s4602_s29 = sshll.u32 %s6456_s22, 5  ;;  %v4609_v15 = vld [vmem:[%s6124_s0 + $0x48] sm:$0xff] }
  0x15   : > { %s3768_s30 = sadd.s32 4294967295, %s3767_s28  ;;  %v4614_v16 = vld [vmem:[%s6124_s0 + $0x40] sm:$0xff]  ;;  %s6458_s16 = smov (!%p366_p6, %s3764_s16), 31  ;;  %v665_v17 = vsel %vm609_vm6, 1, %v6133_v3  ;;  %v664_v18 = vsel %vm608_vm7, 1, %v6133_v3  ;;  %vm611_vm8 = vcmp.ne.s32.totalorder %v4609_v15, 0 }
  0x16   : > { %p375_p7 = scmp.gt.s32.totalorder %s3768_s30, 0  ;;  %s369_s22 = sadd.s32 %s4602_s29, %s6458_s16  ;;  %vm610_vm9 = vcmp.ne.s32.totalorder %v4614_v16, 0  ;;  %vm619_vm10 = vcmp.ne.s32.totalorder %v587_v4, 15  ;;  %v4627_v19 = vld [vmem:[%s6124_s0 + $0x50] sm:$0xff]  ;;  %v667_v20 = vsel %vm611_vm8, 1, %v6133_v3  ;;  %vm618_vm11 = vcmp.ne.s32.totalorder %v4553_v1, 15 }
  0x17   : > { %684 = vperm.xlu1 %4416, %v661_v9   ;;  %678 = vperm.xlu0 %4415, %v659_v10   ;;  %s4621_s11 = sshll.u32 %s369_s22, 2  ;;  %p426_p8 = scmp.eq.s32.totalorder %s4457_s21, 0  ;;  %v666_v21 = vsel %vm610_vm9, 1, %v6133_v3  ;;  %v1411_v22 = vsel %vm619_vm10, 1, %v6133_v3  ;;  %vm612_vm12 = vcmp.ne.s32.totalorder %v4627_v19, 0  ;;  %vm620_vm13 = vcmp.ne.s32.totalorder %v4548_v0, 15 }
  0x18   : > { %s4633_s17 = scalar_lea.vmem %s6125_s1, %s4621_s11  ;;  %s6460_s30 = smov (!%p375_p7, %s3768_s30), 0  ;;  %v4646_v23 = vld [vmem:[%s6124_s0 + $0x58] sm:$0xff]  ;;  %vm444_vm14 = vcmask 1040384   ;;  %vm445_vm15 = vcmask 1044484   ;;  %vm455_vm0 = vcmask 27649   ;;  %vm438_vm1 = vcmask 24576  }
  0x19   : > { %s4638_s16 = scalar_select %p426_p8, 1, 0  ;;  %v460_v24 = vld [vmem:[%s4633_s17] sm:$0xf]  ;;  %v1410_v25 = vsel %vm618_vm11, 1, %v6133_v3  ;;  %v668_v30 = vsel %vm612_vm12, 1, %v6133_v3  ;;  %vm4665_vm4 = vmor %vm444_vm14, %vm445_vm15 }
  0x1a   : > { %s3769_s20 = sshll.u32 %s6460_s30, 1  ;;  %439 = vst.msk [vmem:[#allocation2] sm:$0x1] %vm438_vm1, %v6133_v3  ;;  %v461_v27 = vld [vmem:[%s4633_s17 + $0x4] sm:$0xf]  ;;  %v492_v29 = vrot.slane %v460_v24, 7 }
  0x1b   : > { %690 = vperm.xlu1 %4416, %v663_v13   ;;  %687 = vperm.xlu0 %4415, %v662_v14   ;;  %p380_p9 = scmp.lt.s32.totalorder %s3769_s20, 31  ;;  %v428_v26 = vstv %s4638_s16  ;;  %v462_v28 = vld [vmem:[%s4633_s17 + $0x8] sm:$0xf]  ;;  %vm621_vm2 = vcmp.ne.s32.totalorder %v4558_v2, 15  ;;  %v494_v31 = vrot.slane %v461_v27, 7  ;;  %v1412_v33 = vsel %vm620_vm13, 1, %v6133_v3  ;;  %s6063_s16 = scalar_lea.vmem %s6130_s6, %s4621_s11 }
  0x1c   : > { %v497_v32 = vrot.slane %v462_v28, 7  ;;  %vm613_vm3 = vcmp.ne.s32.totalorder %v4646_v23, 0  ;;  %v6199_v34 = vmov 0  ;;  %vm6131_vm5 = vcmask 27648   ;;  %556 = vst.msk [vmem:[#allocation2 + $0x8] sm:$0xe] %vm455_vm0, %v492_v29 }
  0x1d   : > { %s6462_s20 = smov (!%p380_p9, %s3769_s20), 31  ;;  %v6200_v34 = vsel %vm4665_vm4, 4294967295, %v6199_v34  ;;  %v493_v35 = vrot.slane %v492_v29, 4  ;;  %v463_v36 = vld [vmem:[%s4633_s17 + $0xc] sm:$0xf]  ;;  %vm4672_vm6 = vcmp.eq.s32.totalorder %v428_v26, 1 }
  0x1e   : > { %6201 = vst [vmem:[#allocation3_spill] sm:$0xff] %v6200_v34  ;;  %s383_s30 = sadd.s32 %s4602_s29, %s6462_s20  ;;  %v496_v38 = vrot.slane %v494_v31, 4  ;;  %v499_v39 = vrot.slane %v497_v32, 4  ;;  %v500_v40 = vrot.slane %v463_v36, 7  ;;  %v465_v41 = vld [vmem:[%s4633_s17 + $0x14] sm:$0xf] }
  0x1f   : > { %696 = vperm.xlu1 %4416, %v665_v17   ;;  %693 = vperm.xlu0 %4415, %v664_v18   ;;  %s3771_s7 = sshll.u32 %s383_s30, 2  ;;  %v466_v42 = vld [vmem:[%s4633_s17 + $0x18] sm:$0xf]  ;;  %v4679_v43 = vld [vmem:[%s4633_s17 + $0x1c] sm:$0xf]  ;;  %v506_v44 = vrot.slane %v465_v41, 7  ;;  %v495_v45 = vsel %vm4665_vm4, %v493_v35, %v494_v31 }
  0x20   : > { %v4686_v46 = vld [vmem:[%s6124_s0 + $0x60] sm:$0xff]  ;;  %s385_s12 = scalar_lea.vmem %s6126_s2, %s3771_s7  ;;  %v498_v47 = vsel %vm4665_vm4, %v496_v38, %v497_v32  ;;  %v501_v48 = vsel %vm4665_vm4, %v499_v39, %v500_v40  ;;  %v509_v49 = vrot.slane %v466_v42, 7  ;;  %v512_v50 = vrot.slane %v4679_v43, 7  ;;  %v464_v51 = vld [vmem:[%s4633_s17 + $0x10] sm:$0xf]  ;;  %v599_v9 = vld [vmem:[%s6124_s0 + $0x68] sm:$0xff] }
  0x21   : > { %557 = vst.msk [vmem:[#allocation2 + $0xc] sm:$0xf] %vm6131_vm5, %v495_v45  ;;  %v422_v52 = vld [vmem:[%s385_s12] sm:$0xf]  ;;  %v423_v53 = vld [vmem:[%s385_s12 + $0x4] sm:$0xf] }
  0x22   : > { %558 = vst.msk [vmem:[#allocation2 + $0x10] sm:$0xf] %vm6131_vm5, %v498_v47  ;;  %559 = vst.msk [vmem:[#allocation2 + $0x14] sm:$0xf] %vm6131_vm5, %v501_v48  ;;  %v508_v54 = vrot.slane %v506_v44, 4  ;;  %v502_v55 = vrot.slane %v500_v40, 4 }
  0x23   : > { %702 = vperm.xlu1 %4416, %v667_v20   ;;  %699 = vperm.xlu0 %4415, %v666_v21   ;;  %v430_v56 = vsel %vm4672_vm6, 0, %v422_v52  ;;  %v431_v57 = vsel %vm4672_vm6, 0, %v423_v53  ;;  %v511_v58 = vrot.slane %v509_v49, 4  ;;  %v503_v59 = vrot.slane %v464_v51, 7  ;;  %v950_v17 = vld [vmem:[%s6128_s4] sm:$0x3] }
  0x24   : > { %v1413_v60 = vsel %vm621_vm2, 1, %v6133_v3  ;;  %v447_v61 = vrot.slane %v430_v56, 7  ;;  %v449_v62 = vrot.slane %v431_v57, 7  ;;  %v510_v63 = vsel %vm4665_vm4, %v508_v54, %v509_v49  ;;  %v600_v18 = vld [vmem:[%s6124_s0 + $0x70] sm:$0xff]  ;;  %v469_v35 = vld [vmem:[%s4633_s17 + $0x24] sm:$0xf] }
  0x25   : > { %v669_v0 = vsel %vm613_vm3, 1, %v6133_v3  ;;  %vm614_vm7 = vcmp.ne.s32.totalorder %v4686_v46, 0  ;;  %v513_v1 = vsel %vm4665_vm4, %v511_v58, %v512_v50  ;;  %562 = vst.msk [vmem:[#allocation2 + $0x20] sm:$0xf] %vm6131_vm5, %v510_v63  ;;  %v504_v2 = vsel %vm4665_vm4, %v502_v55, %v503_v59  ;;  %v470_v38 = vld [vmem:[%s4633_s17 + $0x28] sm:$0xf] }
  0x26   : > { %vm622_vm8 = vcmp.ne.s32.totalorder %v4578_v8, 15  ;;  %v448_v4 = vrot.slane %v447_v61, 4  ;;  %v451_v5 = vrot.slane %v449_v62, 4  ;;  %456 = vst.msk [vmem:[#allocation2] sm:$0xe] %vm455_vm0, %v447_v61  ;;  %v505_v6 = vrot.slane %v503_v59, 4 }
  0x27   : > { %1430 = vperm.xlu1 %4416, %v1411_v22   ;;  %1427 = vperm.xlu0 %4415, %v1410_v25   ;;  %563 = vst.msk [vmem:[#allocation2 + $0x24] sm:$0xf] %vm6131_vm5, %v513_v1  ;;  %560 = vst.msk [vmem:[#allocation2 + $0x18] sm:$0xf] %vm6131_vm5, %v504_v2  ;;  %v670_v13 = vsel %vm614_vm7, 1, %v6133_v3  ;;  %v1414_v14 = vsel %vm622_vm8, 1, %v6133_v3 }
  0x28   : > { %459 = vst.msk [vmem:[#allocation2 + $0x8] sm:$0x1] %vm438_vm1, %v451_v5  ;;  %v450_v8 = vsel %vm4665_vm4, %v448_v4, %v449_v62  ;;  %v507_v10 = vsel %vm4665_vm4, %v505_v6, %v506_v44  ;;  %vm623_vm9 = vcmp.ne.s32.totalorder %v4573_v7, 15  ;;  %vm615_vm10 = vcmp.ne.s32.totalorder %v599_v9, 0  ;;  %v601_v7 = vld [vmem:[%s6124_s0 + $0x78] sm:$0xff]  ;;  %s392_s9 = sadd.s32 8, %s3767_s28 }
  0x29   : > { %458 = vst.msk [vmem:[#allocation2 + $0x4] sm:$0xf] %vm6131_vm5, %v450_v8  ;;  %561 = vst.msk [vmem:[#allocation2 + $0x1c] sm:$0xf] %vm6131_vm5, %v507_v10  ;;  %vm6156_vm11 = vcmask 1041408   ;;  %v1415_v21 = vsel %vm623_vm9, 1, %v6133_v3 }
  0x2a   : > { %4364 = vmatprep.subr.msk.bf16.mxu1 %vm6156_vm11, %v950_v17  ;;  %v1090_v20 = vsel %vm6156_vm11, %v950_v17, 0  ;;  %v671_v22 = vsel %vm615_vm10, 1, %v6133_v3  ;;  %vm616_vm12 = vcmp.ne.s32.totalorder %v600_v18, 0  ;;  %vm624_vm13 = vcmp.ne.s32.totalorder %v4594_v12, 15  ;;  %v468_v12 = vld [vmem:[%s4633_s17 + $0x20] sm:$0xf] }
  0x2b   : > { %705 = vperm.xlu1 %4416, %v668_v30   ;;  %1433 = vperm.xlu0 %4415, %v1412_v33   ;;  %v672_v24 = vsel %vm616_vm12, 1, %v6133_v3  ;;  %v1416_v25 = vsel %vm624_vm13, 1, %v6133_v3  ;;  %vm625_vm14 = vcmp.ne.s32.totalorder %v4589_v11, 15  ;;  %vm617_vm15 = vcmp.ne.s32.totalorder %v601_v7, 0  ;;  %v3851_v39 = vld [vmem:[%s6128_s4 + $0x8] sm:$0x3] }
  0x2c   : > { %4057 = vmatpush3.bf16.msra.mxu1 %v1090_v20  ;;  %v1417_v26 = vsel %vm625_vm14, 1, %v6133_v3  ;;  %v673_v27 = vsel %vm617_vm15, 1, %v6133_v3  ;;  %vm627_vm2 = vcmp.ne.s32.totalorder %v4609_v15, 15  ;;  %vm626_vm3 = vcmp.ne.s32.totalorder %v4614_v16, 15  ;;  %4368 = vmatprep.subr.msk.bf16.mxu0 %vm6156_vm11, %v3851_v39  ;;  %v471_v43 = vld [vmem:[%s4633_s17 + $0x2c] sm:$0xf] }
  0x2d   : > { %v514_v28 = vrot.slane %v512_v50, 4  ;;  %v515_v29 = vrot.slane %v468_v12, 7  ;;  %v1419_v11 = vsel %vm627_vm2, 1, %v6133_v3  ;;  %v1418_v30 = vsel %vm626_vm3, 1, %v6133_v3  ;;  %v4799_v49 = vld [vmem:[#allocation2 + $0x10] sm:$0xf] }
  0x2e   : > { %vm629_vm6 = vcmp.ne.s32.totalorder %v4646_v23, 15  ;;  %vm628_vm7 = vcmp.ne.s32.totalorder %v4627_v19, 15  ;;  %vm631_vm8 = vcmp.ne.s32.totalorder %v599_v9, 15  ;;  %vm630_vm9 = vcmp.ne.s32.totalorder %v4686_v46, 15  ;;  %v4801_v50 = vld [vmem:[#allocation2 + $0x14] sm:$0xf] }
  0x2f   : > { %1436 = vperm.xlu1 %4416, %v1413_v60   ;;  %708 = vperm.xlu0 %4415, %v669_v0   ;;  %v516_v31 = vsel %vm4665_vm4, %v514_v28, %v515_v29  ;;  %v1421_v15 = vsel %vm629_vm6, 1, %v6133_v3  ;;  %v1420_v16 = vsel %vm628_vm7, 1, %v6133_v3  ;;  %v1423_v19 = vsel %vm631_vm8, 1, %v6133_v3  ;;  %v4803_v51 = vld [vmem:[#allocation2 + $0x18] sm:$0xf]  ;;  %p393_p10 = scmp.lt.s32.totalorder %s392_s9, 15 }
  0x30   : > { %564 = vst.msk [vmem:[#allocation2 + $0x28] sm:$0xf] %vm6131_vm5, %v516_v31  ;;  %v1422_v23 = vsel %vm630_vm9, 1, %v6133_v3  ;;  %vm633_vm10 = vcmp.ne.s32.totalorder %v601_v7, 15  ;;  %vm632_vm12 = vcmp.ne.s32.totalorder %v600_v18, 15  ;;  %v517_v36 = vrot.slane %v515_v29, 4 }
  0x31   : > { %v1425_v32 = vsel %vm633_vm10, 1, %v6133_v3  ;;  %v1424_v33 = vsel %vm632_vm12, 1, %v6133_v3  ;;  %v518_v37 = vrot.slane %v469_v35, 7  ;;  %v521_v41 = vrot.slane %v470_v38, 7  ;;  %v4805_v52 = vld [vmem:[#allocation2 + $0x1c] sm:$0xf] }
  0x32   : > { %v4786_v42 = vsel %vm6156_vm11, %v3851_v39, 0  ;;  %v524_v45 = vrot.slane %v471_v43, 7  ;;  %v472_v53 = vld [vmem:[%s4633_s17 + $0x30] sm:$0xf]  ;;  %v4808_v54 = vld [vmem:[#allocation2 + $0xc] sm:$0xf]  ;;  %v3853_v56 = vcombine.low %v4799_v49, %v4801_v50  ;;  %v3854_v57 = vcombine.low %v4803_v51, %v4805_v52 }
  0x33   : > { %711 = vperm.xlu1 %4416, %v670_v13   ;;  %1439 = vperm.xlu0 %4415, %v1414_v14   ;;  %v519_v40 = vsel %vm4665_vm4, %v517_v36, %v518_v37  ;;  %6204 = vst [vmem:[#allocation4_spill] sm:$0xff] %v4786_v42  ;;  %v520_v44 = vrot.slane %v518_v37, 4  ;;  %v523_v46 = vrot.slane %v521_v41, 4  ;;  %v4810_v55 = vld [vmem:[#allocation2 + $0x8] sm:$0xe]  ;;  %v527_v59 = vrot.slane %v472_v53, 7 }
  0x34   : > { %565 = vst.msk [vmem:[#allocation2 + $0x2c] sm:$0xf] %vm6131_vm5, %v519_v40  ;;  %4129 = vmatpush3.bf16.msra.mxu0 %v4786_v42  ;;  %v526_v58 = vrot.slane %v524_v45, 4  ;;  %vm6132_vm13 = vcmask 1046528   ;;  %v3852_v60 = vcombine.low %v4810_v55, %v4808_v54  ;;  %v2318_v61 = vrot.slane %v3853_v56, 1  ;;  %s6464_s9 = smov (!%p393_p10, %s392_s9), 15 }
  0x35   : > { %v522_v47 = vsel %vm4665_vm4, %v520_v44, %v521_v41  ;;  %v525_v48 = vsel %vm4665_vm4, %v523_v46, %v524_v45  ;;  %v2320_v62 = vrot.slane %v3854_v57, 1  ;;  %v473_v1 = vld [vmem:[%s4633_s17 + $0x34] sm:$0xf]  ;;  %vm6157_vm14 = vcmask 31744   ;;  %s3773_s28 = sshll.u32 %s6464_s9, 1  ;;  %p432_p11 = scmp.eq.s32.totalorder %s4457_s21, 1 }
  0x36   : > { %566 = vst.msk [vmem:[#allocation2 + $0x30] sm:$0xf] %vm6131_vm5, %v522_v47  ;;  %567 = vst.msk [vmem:[#allocation2 + $0x34] sm:$0xf] %vm6131_vm5, %v525_v48  ;;  %v528_v63 = vsel %vm4665_vm4, %v526_v58, %v527_v59  ;;  %v2317_v0 = vrot.slane %v3852_v60, 1  ;;  %v530_v5 = vrot.slane %v473_v1, 7 }
  0x37   : > { %1442 = vperm.xlu1 %4416, %v1415_v21   ;;  %714 = vperm.xlu0 %4415, %v671_v22   ;;  %568 = vst.msk [vmem:[#allocation2 + $0x38] sm:$0xf] %vm6131_vm5, %v528_v63  ;;  %v2321_v2 = vsel %vm6132_vm13, %v2318_v61, %v2320_v62  ;;  %v474_v6 = vld [vmem:[%s4633_s17 + $0x38] sm:$0xf]  ;;  %v475_v9 = vld [vmem:[%s4633_s17 + $0x3c] sm:$0xf] }
  0x38   : > { %v2319_v4 = vsel %vm6132_vm13, %v2317_v0, %v2318_v61  ;;  %p398_p12 = scmp.lt.s32.totalorder %s3773_s28, 31  ;;  %v532_v8 = vrot.slane %v530_v5, 4  ;;  %v533_v10 = vrot.slane %v474_v6, 7  ;;  %v536_v13 = vrot.slane %v475_v9, 7  ;;  %v4832_v17 = vld [vmem:[%s6128_s4 + $0x2] sm:$0x3] }
  0x39   : > { %4130 = vmatprep.mubr.msk.bf16.mxu0 %vm6157_vm14, %v2319_v4  ;;  %v529_v14 = vrot.slane %v527_v59, 4  ;;  %s433_s10 = scalar_select %p432_p11, 1, 0  ;;  %v3869_v18 = vld [vmem:[%s6128_s4 + $0xa] sm:$0x3]  ;;  %4365 = vmatprep.subr.msk.bf16.mxu1 %vm6156_vm11, %v4832_v17  ;;  %vm440_vm2 = vcmask 25601  }
  0x3a   : > { %4131 = vmatmul.mubr.msk.bf16.vlgmr.msra.gmra.mrb[0].mxu0 %vm6157_vm14, %v2321_v2  ;;  %s6466_s28 = smov (!%p398_p12, %s3773_s28), 31  ;;  %v534_v20 = vsel %vm4665_vm4, %v532_v8, %v533_v10  ;;  %v538_v21 = vrot.slane %v536_v13, 4  ;;  %4370 = vmatprep.subr.msk.bf16.mxu0 %vm6156_vm11, %v3869_v18  ;;  %v1992_v12 = vld [vmem:[#allocation2 + $0x28] sm:$0xf]  ;;  %441 = vst.msk [vmem:[#allocation2 + $0x50] sm:$0x2] %vm440_vm2, %v6133_v3 }
  0x3b   : > { %717 = vperm.xlu1 %4416, %v672_v24   ;;  %1445 = vperm.xlu0 %4415, %v1416_v25   ;;  %v434_v22 = vstv %s433_s10  ;;  %570 = vst.msk [vmem:[#allocation2 + $0x40] sm:$0xf] %vm6131_vm5, %v534_v20  ;;  %v531_v7 = vsel %vm4665_vm4, %v529_v14, %v530_v5  ;;  %s401_s21 = sadd.s32 %s4602_s29, %s6466_s28  ;;  %v4855_v25 = vld [vmem:[#allocation2 + $0x20] sm:$0xf]  ;;  %v1993_v28 = vld [vmem:[#allocation2 + $0x2c] sm:$0xf] }
  0x3c   : > { %572 = vst.msk [vmem:[#allocation2 + $0x48] sm:$0x1] %vm438_vm1, %v538_v21  ;;  %s3775_s17 = sshll.u32 %s401_s21, 2  ;;  %vm4848_vm15 = vcmp.eq.s32.totalorder %v434_v22, 1  ;;  %v3856_v31 = vcombine.low %v1992_v12, %v1993_v28  ;;  %v4888_v40 = vld [vmem:[%s6128_s4 + $0xc] sm:$0x3] }
  0x3d   : > { %569 = vst.msk [vmem:[#allocation2 + $0x3c] sm:$0xf] %vm6131_vm5, %v531_v7  ;;  %s403_s18 = scalar_lea.vmem %s6127_s3, %s3775_s17  ;;  %v4892_v41 = vld [vmem:[#allocation2] sm:$0xe]  ;;  %v4894_v43 = vld [vmem:[#allocation2 + $0x8] sm:$0xf] }
  0x3e   : > { %v424_v36 = vld [vmem:[%s403_s18] sm:$0xf]  ;;  %v4896_v44 = vld [vmem:[#allocation2 + $0xc] sm:$0xf]  ;;  %v4898_v45 = vld [vmem:[#allocation2 + $0x4] sm:$0xf] }
  0x3f   : > { %1448 = vperm.xlu1 %4416, %v1417_v26   ;;  %720 = vperm.xlu0 %4415, %v673_v27   ;;  %v4857_v26 = vld [vmem:[#allocation2 + $0x24] sm:$0xf]  ;;  %v436_v37 = vsel %vm4848_vm15, 0, %v424_v36  ;;  %v4900_v46 = vld [vmem:[#allocation2 + $0x10] sm:$0xf]  ;;  %v3798_v56 = vcombine.low %v4892_v41, %v4898_v45  ;;  %v3799_v57 = vcombine.low %v4894_v43, %v4896_v44 }
  0x40   : > { %v425_v27 = vld [vmem:[%s403_s18 + $0x4] sm:$0xf]  ;;  %v4879_v39 = vrot.slane %v436_v37, 7  ;;  %v4902_v47 = vld [vmem:[#allocation2 + $0x14] sm:$0xf] }
  0x41   : > { %v437_v29 = vsel %vm4848_vm15, 0, %v425_v27  ;;  %v3800_v58 = vcombine.low %v4900_v46, %v4902_v47  ;;  %v1252_v59 = vrot.slane %v3798_v56, 1  ;;  %v1253_v60 = vrot.slane %v3799_v57, 1 }
  0x42   : > { %6209 = vst [vmem:[#allocation7_spill] sm:$0xff] %v4879_v39  ;;  %583 = vst.msk [vmem:[#allocation2 + $0x48] sm:$0xe] %vm455_vm0, %v4879_v39 }
  0x43   : > { %1454 = vperm.xlu1 %4416, %v1419_v11   ;;  %1451 = vperm.xlu0 %4415, %v1418_v30   ;;  %v3855_v11 = vcombine.low %v4855_v25, %v4857_v26  ;;  %v2642_v30 = vsel %vm6156_vm11, %v3869_v18, 0  ;;  %v4910_v61 = vrot.slane %v3800_v58, 1  ;;  %v4913_v0 = vsel %vm6132_vm13, %v1252_v59, %v1253_v60 }
  0x44   : > { %4147 = vmatpush3.bf16.msra.mxu0 %v2642_v30  ;;  %6211 = vst [vmem:[#allocation9_spill] sm:$0xff] %v4913_v0  ;;  %v4949_v58 = vsel %vm6156_vm11, %v4888_v40, 0 }
  0x45   : > { %4371 = vmatprep.subr.msk.bf16.mxu0 %vm6156_vm11, %v4888_v40  ;;  %6210 = vst [vmem:[#allocation8_spill] sm:$0xff] %v4910_v61  ;;  %v4917_v1 = vsel %vm6132_vm13, %v1253_v60, %v4910_v61 }
  0x46   : > { %6212 = vst [vmem:[#allocation10_spill] sm:$0xff] %v4917_v1 }
  0x47   : > { %1460 = vperm.xlu1 %4416, %v1421_v15   ;;  %1457 = vperm.xlu0 %4415, %v1420_v16   ;;  %v535_v15 = vrot.slane %v533_v10, 4  ;;  %v4864_v16 = vrot.slane %v437_v29, 7  ;;  %v4932_v29 = vsel %vm6156_vm11, %v4832_v17, 0 }
  0x49   : > { %6207 = vst [vmem:[#allocation5_spill] sm:$0xff] %v4864_v16  ;;  %v537_v38 = vsel %vm4665_vm4, %v535_v15, %v536_v13 }
  0x4a   : > { %571 = vst.msk [vmem:[#allocation2 + $0x44] sm:$0xf] %vm6131_vm5, %v537_v38  ;;  %vm1523_vm5 = vsmask.f32 5392 }
  0x4b   : > { %1466 = vperm.xlu1 %4416, %v1423_v19   ;;  %1463 = vperm.xlu0 %4415, %v1422_v23   ;;  %v2322_v19 = vrot.slane %v3855_v11, 1  ;;  %v4866_v23 = vrot.slane %v3856_v31, 1 }
  0x4d   : > { %6208 = vst [vmem:[#allocation6_spill] sm:$0xff] %v4866_v23  ;;  %v2325_v35 = vsel %vm6132_vm13, %v2322_v19, %v4866_v23  ;;  %v2758_v23 = vld [vmem:[#allocation2 + $0x14] sm:$0xf] }
  0x4f   : > { %1472 = vperm.xlu1 %4416, %v1425_v32   ;;  %1469 = vperm.xlu0 %4415, %v1424_v33   ;;  %v579_v32 = vrot.slane %v4864_v16, 4  ;;  %v2323_v33 = vsel %vm6132_vm13, %v2320_v62, %v2322_v19 }
  0x50   : > { %4134 = vmatprep.mubr.msk.bf16.mxu0 %vm6157_vm14, %v2323_v33 }
  0x51   : > { %585 = vst.msk [vmem:[#allocation2 + $0x50] sm:$0x1] %vm438_vm1, %v579_v32  ;;  %4135 = vmatmul.mubr.msk.bf16.gmra.mrb[4].mxu0 %vm6157_vm14, %v2325_v35  ;;  %v4938_v32 = vld [vmem:[%s6128_s4 + $0x4] sm:$0x3] }
  0x52   : > { %v4953_v59 = vsel %vm6156_vm11, %v4938_v32, 0 }
  0x53   : > { %6215 = vst [vmem:[#allocation11_spill] sm:$0xff] %v4953_v59 }
  0x92   : > { %v682_v48 = vpop.permute.xlu1 %681  ;;  %v676_v53 = vpop.permute.xlu0 %675 }
  0x93   : > { %vm724_vm0 = vcmp.eq.s32.totalorder %v682_v48, 1  ;;  %vm722_vm1 = vcmp.eq.s32.totalorder %v676_v53, 1 }
  0x94   : > { %vm740_vm3 = vmpackc.low %vm724_vm0, %vm724_vm0 }
  0x95   : > { %vm738_vm6 = vmpackc.low %vm722_vm1, %vm722_vm1  ;;  %v4921_v6 = vsel %vm740_vm3, 65537, %v6133_v3  ;;  %vm770_vm1 = vsmask.f32 256  ;;  %vm771_vm3 = vsmask.f32 4368 }
  0x96   : > { %v685_v62 = vpop.permute.xlu1 %684  ;;  %v679_v63 = vpop.permute.xlu0 %678  ;;  %v754_v8 = vsel %vm738_vm6, 65537, %v6133_v3  ;;  %v791_v14 = vshrl.u32 %v4921_v6, 16 }
  0x97   : > { %vm725_vm7 = vcmp.eq.s32.totalorder %v685_v62, 1  ;;  %vm723_vm8 = vcmp.eq.s32.totalorder %v679_v63, 1  ;;  %v774_v21 = vshrl.u32 %v754_v8, 16  ;;  %v777_v57 = vshll.u32 %v754_v8, 16 }
  0x98   : > { %vm741_vm9 = vmpackc.low %vm725_vm7, %vm725_vm7  ;;  %v793_v11 = vrot.slane %v791_v14, 7  ;;  %v4968_v14 = vld [vmem:[#allocation2 + $0x24] sm:$0xf] }
  0x99   : > { %v757_v2 = vsel %vm741_vm9, 65537, %v6133_v3  ;;  %vm739_vm10 = vmpackc.low %vm723_vm8, %vm723_vm8  ;;  %v776_v33 = vrot.slane %v774_v21, 7 }
  0x9a   : > { %v691_v4 = vpop.permute.xlu1 %690  ;;  %v688_v5 = vpop.permute.xlu0 %687  ;;  %v800_v9 = vshrl.u32 %v757_v2, 16  ;;  %v755_v10 = vsel %vm739_vm10, 65537, %v6133_v3  ;;  %v803_v12 = vshll.u32 %v757_v2, 16  ;;  %vm4942_vm7 = vmor %vm770_vm1, %vm771_vm3  ;;  %v798_v56 = vrot.slane %v793_v11, 4 }
  0x9b   : > { %vm727_vm12 = vcmp.eq.s32.totalorder %v691_v4, 1  ;;  %vm726_vm2 = vcmp.eq.s32.totalorder %v688_v5, 1  ;;  %v782_v7 = vshrl.u32 %v755_v10, 16  ;;  %v785_v62 = vshll.u32 %v755_v10, 16 }
  0x9c   : > { %vm743_vm15 = vmpackc.low %vm727_vm12, %vm727_vm12  ;;  %v802_v22 = vrot.slane %v800_v9, 7  ;;  %v794_v9 = vshll.u32 %v4921_v6, 16  ;;  %v4960_v8 = vor.u32 %v777_v57, %v776_v33  ;;  %v5013_v57 = vld [vmem:[#allocation2 + $0x1c] sm:$0xf] }
  0x9d   : > { %v759_v13 = vsel %vm743_vm15, 65537, %v6133_v3  ;;  %vm742_vm0 = vmpackc.low %vm726_vm2, %vm726_vm2  ;;  %v784_v36 = vrot.slane %v782_v7, 7 }
  0x9e   : > { %v697_v18 = vpop.permute.xlu1 %696  ;;  %v694_v20 = vpop.permute.xlu0 %693  ;;  %v818_v24 = vshrl.u32 %v759_v13, 16  ;;  %v758_v27 = vsel %vm742_vm0, 65537, %v6133_v3  ;;  %v821_v30 = vshll.u32 %v759_v13, 16  ;;  %v805_v35 = vor.u32 %v803_v12, %v802_v22  ;;  %v4966_v13 = vld [vmem:[#allocation2 + $0x20] sm:$0xf] }
  0x9f   : > { %v809_v31 = vshrl.u32 %v758_v27, 16  ;;  %vm729_vm6 = vcmp.eq.s32.totalorder %v697_v18, 1  ;;  %v812_v53 = vshll.u32 %v758_v27, 16  ;;  %vm728_vm8 = vcmp.eq.s32.totalorder %v694_v20, 1  ;;  %v1984_v27 = vld [vmem:[#allocation2 + $0x8] sm:$0xf] }
  0xa0   : > { %v4928_v28 = vrot.slane %v818_v24, 7  ;;  %v807_v60 = vrot.slane %v802_v22, 4  ;;  %vm4955_vm9 = vmpackc.low %vm729_vm6, %vm729_vm6  ;;  %v4964_v40 = vsel %vm4942_vm7, %v798_v56, %v805_v35  ;;  %v787_v18 = vor.u32 %v785_v62, %v784_v36  ;;  %v641_v22 = vld [vmem:[#allocation2] sm:$0xf]  ;;  %v5011_v56 = vld [vmem:[#allocation2 + $0x18] sm:$0xf] }
  0xa1   : > { %v811_v48 = vrot.slane %v809_v31, 7  ;;  %vm4972_vm10 = vmpackc.low %vm728_vm8, %vm728_vm8  ;;  %v789_v7 = vrot.slane %v784_v36, 4  ;;  %v761_v31 = vsel %vm4955_vm9, 65537, %v6133_v3  ;;  %v796_v36 = vor.u32 %v794_v9, %v793_v11 }
  0xa2   : > { %v703_v15 = vpop.permute.xlu1 %702  ;;  %v700_v37 = vpop.permute.xlu0 %699  ;;  %v823_v38 = vor.u32 %v821_v30, %v4928_v28  ;;  %v760_v35 = vsel %vm4972_vm10, 65537, %v6133_v3  ;;  %vm916_vm6 = vcmp.ne.s16.totalorder %v4960_v8, 0  ;;  %vm6141_vm9 = vcmp.ne.s16.totalorder %v4964_v40, 0 }
  0xa3   : > { %v814_v63 = vor.u32 %v812_v53, %v811_v48  ;;  %v816_v2 = vrot.slane %v811_v48, 4  ;;  %vm731_vm15 = vcmp.eq.s32.totalorder %v703_v15, 1  ;;  %vm730_vm1 = vcmp.eq.s32.totalorder %v700_v37, 1 }
  0xa4   : > { %vm5007_vm8 = vmpackc.low %vm731_vm15, %vm731_vm15  ;;  %v836_v62 = vshrl.u32 %v761_v31, 16  ;;  %v827_v37 = vshrl.u32 %v760_v35, 16  ;;  %v933_v4 = vsel %vm916_vm6, %v641_v22, 0  ;;  %v830_v10 = vshll.u32 %v760_v35, 16 }
  0xa5   : > { %v4978_v6 = vsel %vm4942_vm7, %v807_v60, %v814_v63  ;;  %v4982_v21 = vsel %vm4942_vm7, %v816_v2, %v823_v38  ;;  %v780_v38 = vrot.slane %v776_v33, 4  ;;  %vm746_vm10 = vmpackc.low %vm730_vm1, %vm730_vm1  ;;  %v5029_v60 = vsel %vm4942_vm7, %v789_v7, %v796_v36  ;;  %v5031_v63 = vld [vmem:[#allocation2 + $0x20] sm:$0xf]  ;;  %v5033_v2 = vld [vmem:[#allocation2 + $0x24] sm:$0xf] }
  0xa6   : > { %v1431_v5 = vpop.permute.xlu1 %1430  ;;  %vm6146_vm2 = vcmp.ne.s16.totalorder %v4978_v6, 0  ;;  %vm6145_vm0 = vcmp.ne.s16.totalorder %v4982_v21, 0  ;;  %v1428_v24 = vpop.permute.xlu0 %1427  ;;  %v763_v9 = vsel %vm5007_vm8, 65537, %v6133_v3  ;;  %vm6142_vm1 = vcmp.ne.s16.totalorder %v5029_v60, 0 }
  0xa7   : > { %vm1475_vm12 = vcmp.eq.s32.totalorder %v1431_v5, 1  ;;  %v2778_v12 = vsel %vm6146_vm2, %v4966_v13, 0  ;;  %v2779_v30 = vsel %vm6145_vm0, %v4968_v14, 0  ;;  %vm1474_vm13 = vcmp.eq.s32.totalorder %v1428_v24, 1 }
  0xa8   : > { %vm4986_vm3 = vmpackc.low %vm1475_vm12, %vm1475_vm12  ;;  %v5003_v48 = vcombine.low %v2778_v12, %v2779_v30  ;;  %vm1522_vm12 = vsmask.f32 1280  ;;  %v5025_v33 = vsel %vm4942_vm7, %v780_v38, %v787_v18  ;;  %v5039_v5 = vsel %vm916_vm6, %v1984_v27, 0  ;;  %v2757_v12 = vld [vmem:[#allocation2 + $0x10] sm:$0xf] }
  0xa9   : > { %v1507_v11 = vsel %vm4986_vm3, 65537, %v6133_v3  ;;  %vm1490_vm15 = vmpackc.low %vm1474_vm13, %vm1474_vm13  ;;  %v762_v18 = vsel %vm746_vm10, 65537, %v6133_v3  ;;  %vm6147_vm13 = vcmp.ne.s16.totalorder %v5025_v33, 0  ;;  %v936_v27 = vsel %vm6141_vm9, %v4896_v44, 0 }
  0xaa   : > { %6222 = vst [vmem:[#allocation12_spill] sm:$0xff] %v5003_v48  ;;  %v1535_v7 = vshrl.u32 %v1507_v11, 16  ;;  %v1538_v20 = vshll.u32 %v1507_v11, 16  ;;  %v1506_v24 = vsel %vm1490_vm15, 65537, %v6133_v3  ;;  %v5053_v30 = vrot.slane %v836_v62, 7  ;;  %v706_v19 = vpop.permute.xlu1 %705  ;;  %v1434_v16 = vpop.permute.xlu0 %1433 }
  0xab   : > { %v1526_v22 = vshrl.u32 %v1506_v24, 16  ;;  %v839_v36 = vshll.u32 %v761_v31, 16  ;;  %v829_v38 = vrot.slane %v827_v37, 7  ;;  %v1529_v53 = vshll.u32 %v1506_v24, 16 }
  0xac   : > { %v854_v11 = vshrl.u32 %v763_v9, 16  ;;  %v845_v15 = vshrl.u32 %v762_v18, 16  ;;  %v1537_v42 = vrot.slane %v1535_v7, 6  ;;  %v1540_v34 = vrot.slane %v1538_v20, 7 }
  0xad   : > { %v1528_v3 = vrot.slane %v1526_v22, 6  ;;  %v1531_v39 = vrot.slane %v1529_v53, 7  ;;  %v934_v48 = vsel %vm6147_vm13, %v4898_v45, 0  ;;  %v5060_v62 = vsel %vm916_vm6, %v2757_v12, 0  ;;  %vm5075_vm6 = vmor %vm1522_vm12, %vm1523_vm5 }
  0xae   : > { %6225 = vst [vmem:[#allocation13_spill] sm:$0xff] %v5060_v62  ;;  %v825_v31 = vrot.slane %v4928_v28, 4  ;;  %vm732_vm3 = vcmp.eq.s32.totalorder %v706_v19, 1  ;;  %v935_v35 = vsel %vm6142_vm1, %v4894_v43, 0  ;;  %v841_v37 = vor.u32 %v839_v36, %v5053_v30 }
  0xaf   : > { %v832_v7 = vor.u32 %v830_v10, %v829_v38  ;;  %v834_v20 = vrot.slane %v829_v38, 4  ;;  %v5067_v24 = vor.u32 %v1531_v39, %v1528_v3  ;;  %vm6158_vm8 = vsmask.f32 7424  ;;  %vm748_vm15 = vmpackc.low %vm732_vm3, %vm732_vm3  ;;  %v1437_v38 = vpop.permute.xlu1 %1436 }
  0xb0   : > { %v5071_v22 = vsel %vm6147_vm13, %v2758_v23, 0  ;;  %vm1476_vm10 = vcmp.eq.s32.totalorder %v1434_v16, 1  ;;  %v3780_v8 = vcombine.low %v933_v4, %v934_v48  ;;  %v5079_v12 = vcombine.low %v935_v35, %v936_v27  ;;  %v3044_v48 = vld [vmem:[#allocation2 + $0x10] sm:$0xe] }
  0xb1   : > { %6226 = vst [vmem:[#allocation14_spill] sm:$0xff] %v5071_v22  ;;  %v5081_v36 = vrot.slane %v854_v11, 7  ;;  %v847_v10 = vrot.slane %v845_v15, 7  ;;  %v5083_v3 = vor.u32 %v1540_v34, %v1537_v42  ;;  %v1533_v39 = vrot.slane %v5067_v24, 4  ;;  %vm1492_vm12 = vmpackc.low %vm1476_vm10, %vm1476_vm10  ;;  %v709_v15 = vpop.permute.xlu0 %708 }
  0xb2   : > { %v843_v53 = vrot.slane %v5053_v30, 4  ;;  %v857_v62 = vshll.u32 %v763_v9, 16  ;;  %v848_v22 = vshll.u32 %v762_v18, 16  ;;  %vm1684_vm5 = vcmp.ne.s16.totalorder %v5067_v24, 0 }
  0xb3   : > { %v5092_v4 = vsel %vm4942_vm7, %v825_v31, %v832_v7  ;;  %v5096_v34 = vsel %vm4942_vm7, %v834_v20, %v841_v37  ;;  %v5101_v42 = vsel %vm5075_vm6, %v1533_v39, %v5083_v3  ;;  %v998_v19 = vshll.u32 %v3780_v8, 16 }
  0xb4   : > { %6229 = vst [vmem:[#allocation15_spill] sm:$0xff] %v5096_v34  ;;  %vm1685_vm3 = vcmp.ne.s16.totalorder %v5101_v42, 0  ;;  %v6230_v9 = vmov 0   ;;  %v1003_v27 = vshll.u32 %v5079_v12, 16  ;;  %vm1477_vm9 = vcmp.eq.s32.totalorder %v1437_v38, 1 }
  0xb5   : > { %v764_v18 = vsel %vm748_vm15, 65537, %v6230_v9  ;;  %v859_v30 = vor.u32 %v857_v62, %v5081_v36  ;;  %v850_v11 = vor.u32 %v848_v22, %v847_v10  ;;  %v3248_v31 = vsel %vm1684_vm5, %v3044_v48, 0  ;;  %vm1493_vm1 = vmpackc.low %vm1477_vm9, %vm1477_vm9 }
  0xb6   : > { %v3249_v16 = vsel %vm1685_vm3, %v2758_v23, 0  ;;  %v1508_v37 = vsel %vm1492_vm12, 65537, %v6230_v9  ;;  %v996_v7 = vshrl.u32 %v3780_v8, 16  ;;  %v1000_v20 = vrot.slane %v998_v19, 1  ;;  %v1440_v19 = vpop.permute.xlu0 %1439 }
  0xb7   : > { %v5113_v35 = vcombine.low %v3248_v31, %v3249_v16  ;;  %v852_v59 = vrot.slane %v847_v10, 4  ;;  %v863_v38 = vshrl.u32 %v764_v18, 16  ;;  %v1509_v62 = vsel %vm1493_vm1, 65537, %v6230_v9  ;;  %v712_v16 = vpop.permute.xlu1 %711 }
  0xb8   : > { %v1001_v22 = vor.u32 %v1000_v20, %v996_v7  ;;  %v1005_v1 = vrot.slane %v1003_v27, 1  ;;  %v1555_v61 = vshrl.u32 %v1509_v62, 16  ;;  %v1558_v48 = vshll.u32 %v1509_v62, 16 }
  0xb9   : > { %6231 = vst [vmem:[#allocation16_spill] sm:$0xff] %v5113_v35  ;;  %v1545_v0 = vshrl.u32 %v1508_v37, 16  ;;  %vm733_vm10 = vcmp.eq.s32.totalorder %v709_v15, 1  ;;  %v937_v23 = vsel %vm6146_vm2, %v4900_v46, 0  ;;  %v938_v8 = vsel %vm6145_vm0, %v4902_v47, 0 }
  0xba   : > { %vm6155_vm9 = vcmp.ne.s16.totalorder %v5092_v4, 0  ;;  %v5127_v10 = vsel %vm4942_vm7, %v843_v53, %v850_v11  ;;  %v1548_v27 = vshll.u32 %v1508_v37, 16  ;;  %v1006_v31 = vsel %vm6158_vm8, %v1001_v22, %v1005_v1  ;;  %vm749_vm15 = vmpackc.low %vm733_vm10, %vm733_vm10 }
  0xbb   : > { %6232 = vst [vmem:[#allocation17_spill] sm:$0xff] %v5127_v10  ;;  %vm6150_vm1 = vcmp.ne.s16.totalorder %v5096_v34, 0  ;;  %v5133_v7 = vsel %vm4942_vm7, %v852_v59, %v859_v30  ;;  %v5135_v20 = vrot.slane %v863_v38, 7  ;;  %4058 = vmatprep.mubr.msk.bf16.mxu1 %vm6157_vm14, %v1006_v31  ;;  %v3782_v62 = vcombine.low %v937_v23, %v938_v8  ;;  %v715_v31 = vpop.permute.xlu0 %714 }
  0xbc   : > { %6233 = vst [vmem:[#allocation18_spill] sm:$0xff] %v5133_v7  ;;  %v1007_v39 = vshrl.u32 %v5079_v12, 16  ;;  %v1557_v35 = vrot.slane %v1555_v61, 6  ;;  %v1560_v53 = vrot.slane %v1558_v48, 7  ;;  %vm1478_vm12 = vcmp.eq.s32.totalorder %v1440_v19, 1 }
  0xbd   : > { %vm6154_vm0 = vcmp.ne.s16.totalorder %v5127_v10, 0  ;;  %v866_v11 = vshll.u32 %v764_v18, 16  ;;  %v1547_v37 = vrot.slane %v1545_v0, 6  ;;  %v1011_v22 = vshll.u32 %v3782_v62, 16  ;;  %vm1494_vm2 = vmpackc.low %vm1478_vm12, %vm1478_vm12 }
  0xbe   : > { %v1550_v59 = vrot.slane %v1548_v27, 7  ;;  %v1009_v30 = vor.u32 %v1007_v39, %v1005_v1  ;;  %vm734_vm13 = vcmp.eq.s32.totalorder %v712_v16, 1  ;;  %v1510_v38 = vsel %vm1494_vm2, 65537, %v6230_v9  ;;  %v1443_v39 = vpop.permute.xlu1 %1442 }
  0xbf   : > { %v5144_v23 = vsel %vm749_vm15, 65537, %v6230_v9  ;;  %v1013_v61 = vrot.slane %v1011_v22, 1  ;;  %v939_v12 = vsel %vm6155_vm9, %v5011_v56, 0  ;;  %v940_v15 = vsel %vm6150_vm1, %v5013_v57, 0  ;;  %vm750_vm2 = vmpackc.low %vm734_vm13, %vm734_vm13 }
  0xc0   : > { %vm6153_vm10 = vcmp.ne.s16.totalorder %v5133_v7, 0  ;;  %v1543_v0 = vrot.slane %v5083_v3, 4  ;;  %v5155_v1 = vor.u32 %v866_v11, %v5135_v20  ;;  %v1561_v18 = vor.u32 %v1560_v53, %v1557_v35 }
  0xc1   : > { %v1014_v8 = vsel %vm6158_vm8, %v1009_v30, %v1013_v61  ;;  %v1565_v19 = vshrl.u32 %v1510_v38, 16  ;;  %v1568_v27 = vshll.u32 %v1510_v38, 16  ;;  %v5162_v16 = vsel %vm1684_vm5, %v4892_v41, 0 }
  0xc2   : > { %v1551_v22 = vor.u32 %v1550_v59, %v1547_v37  ;;  %v872_v3 = vshrl.u32 %v5144_v23, 16  ;;  %4059 = vmatmul.mubr.msk.bf16.vlgmr.msra.gmra.mrb[0].mxu1 %vm6157_vm14, %v1014_v8  ;;  %v3783_v35 = vcombine.low %v939_v12, %v940_v15  ;;  %v1015_v48 = vshrl.u32 %v3782_v62, 16 }
  0xc3   : > { %v1567_v53 = vrot.slane %v1565_v19, 6  ;;  %v1570_v11 = vrot.slane %v1568_v27, 7  ;;  %vm1479_vm15 = vcmp.eq.s32.totalorder %v1443_v39, 1  ;;  %4075 = vmatpush3.bf16.msra.mxu1 %v4932_v29  ;;  %v1563_v30 = vrot.slane %v1561_v18, 4  ;;  %v1446_v19 = vpop.permute.xlu0 %1445 }
  0xc4   : > { %v766_v38 = vsel %vm750_vm2, 65537, %v6230_v9  ;;  %v1019_v34 = vshll.u32 %v3783_v35, 16  ;;  %vm1495_vm13 = vmpackc.low %vm1479_vm15, %vm1479_vm15  ;;  %vm735_vm12 = vcmp.eq.s32.totalorder %v715_v31, 1  ;;  %4366 = vmatprep.subr.msk.bf16.mxu1 %vm6156_vm11, %v4938_v32  ;;  %v1017_v37 = vor.u32 %v1015_v48, %v1013_v61 }
  0xc5   : > { %v1571_v41 = vor.u32 %v1570_v11, %v1567_v53  ;;  %v1511_v59 = vsel %vm1495_vm13, 65537, %v6230_v9  ;;  %v941_v62 = vsel %vm6154_vm0, %v5031_v63, 0  ;;  %vm751_vm1 = vmpackc.low %vm735_vm12, %vm735_vm12  ;;  %v942_v39 = vsel %vm6153_vm10, %v5033_v2, 0  ;;  %v718_v11 = vpop.permute.xlu1 %717 }
  0xc6   : > { %v1021_v12 = vrot.slane %v1019_v34, 1  ;;  %v1575_v15 = vshrl.u32 %v1511_v59, 16  ;;  %v1578_v29 = vshll.u32 %v1511_v59, 16  ;;  %v1702_v32 = vsel %vm1685_vm3, %v4898_v45, 0 }
  0xc7   : > { %v1553_v8 = vrot.slane %v1551_v22, 4  ;;  %v874_v61 = vrot.slane %v872_v3, 7  ;;  %v881_v48 = vshrl.u32 %v766_v38, 16  ;;  %v5182_v27 = vsel %vm5075_vm6, %v1563_v30, %v1571_v41 }
  0xc8   : > { %v1022_v34 = vsel %vm6158_vm8, %v1017_v37, %v1021_v12  ;;  %v1577_v31 = vrot.slane %v1575_v15, 6  ;;  %v1580_v53 = vrot.slane %v1578_v29, 7  ;;  %v5187_v59 = vsel %vm5075_vm6, %v1543_v0, %v1551_v22 }
  0xc9   : > { %v875_v7 = vshll.u32 %v5144_v23, 16  ;;  %4062 = vmatprep.mubr.msk.bf16.mxu1 %vm6157_vm14, %v1022_v34  ;;  %v767_v45 = vsel %vm751_vm1, 65537, %v6230_v9  ;;  %v5192_v3 = vcombine.low %v941_v62, %v942_v39  ;;  %v5196_v30 = vsel %vm5075_vm6, %v1553_v8, %v1561_v18  ;;  %v721_v34 = vpop.permute.xlu0 %720  ;;  %v5266_v8 = vld [vmem:[#allocation2 + $0x1c] sm:$0xf] }
  0xca   : > { %v1573_v37 = vrot.slane %v1571_v41, 4  ;;  %v5198_v15 = vor.u32 %v1580_v53, %v1577_v31  ;;  %vm1480_vm2 = vcmp.eq.s32.totalorder %v1446_v19, 1  ;;  %v5200_v29 = vrot.slane %v881_v48, 7  ;;  %v1449_v19 = vpop.permute.xlu1 %1448 }
  0xcb   : > { %vm1688_vm15 = vcmp.ne.s16.totalorder %v5182_v27, 0  ;;  %v1023_v0 = vshrl.u32 %v3783_v35, 16  ;;  %v1027_v23 = vshll.u32 %v5192_v3, 16  ;;  %v877_v22 = vor.u32 %v875_v7, %v874_v61  ;;  %vm5212_vm12 = vmpackc.low %vm1480_vm2, %vm1480_vm2 }
  0xcc   : > { %v5207_v62 = vsel %vm5075_vm6, %v1573_v37, %v5198_v15  ;;  %v890_v39 = vshrl.u32 %v767_v45, 16  ;;  %vm736_vm1 = vcmp.eq.s32.totalorder %v718_v11, 1  ;;  %vm6236_vm10 = vcmp.ne.s16.totalorder %v5025_v33, 0 }
  0xcd   : > { %vm1689_vm13 = vcmp.ne.s16.totalorder %v5207_v62, 0  ;;  %v1025_v18 = vor.u32 %v1023_v0, %v1021_v12  ;;  %v5210_v41 = vrot.slane %v1027_v23, 1  ;;  %v2002_v7 = vsel %vm6236_vm10, %v4808_v54, 0  ;;  %vm752_vm2 = vmpackc.low %vm736_vm1, %vm736_vm1 }
  0xce   : > { %vm1686_vm0 = vcmp.ne.s16.totalorder %v5187_v59, 0  ;;  %v884_v35 = vshll.u32 %v766_v38, 16  ;;  %v3252_v48 = vsel %vm1688_vm15, %v4966_v13, 0  ;;  %v3253_v12 = vsel %vm1689_vm13, %v4968_v14, 0  ;;  %v5240_v14 = vld [vmem:[#allocation2 + $0x18] sm:$0xf] }
  0xcf   : > { %v6237_v31 = vrot.slane %v5081_v36, 4  ;;  %vm1687_vm10 = vcmp.ne.s16.totalorder %v5196_v30, 0  ;;  %v5234_v38 = vcombine.low %v3252_v48, %v3253_v12  ;;  %v1030_v13 = vsel %vm6158_vm8, %v1025_v18, %v5210_v41  ;;  %v1455_v12 = vpop.permute.xlu1 %1454 }
  0xd0   : > { %v886_v53 = vor.u32 %v884_v35, %v5200_v29  ;;  %v5243_v37 = vrot.slane %v890_v39, 7  ;;  %4063 = vmatmul.mubr.msk.bf16.gmra.mrb[4].mxu1 %vm6157_vm14, %v1030_v13  ;;  %v1512_v36 = vsel %vm5212_vm12, 65537, %v6230_v9  ;;  %v5253_v0 = vcombine.low %v5162_v16, %v1702_v32 }
  0xd1   : > { %v5231_v33 = vsel %vm4942_vm7, %v6237_v31, %v5155_v1  ;;  %6239 = vst [vmem:[#allocation20_spill] sm:$0xff] %v5234_v38  ;;  %v5250_v1 = vcombine.low %v5039_v5, %v2002_v7  ;;  %v5258_v11 = vsel %vm1686_vm0, %v5240_v14, 0  ;;  %v6242_v23 = vrot.slane %v5135_v20, 4  ;;  %v1452_v31 = vpop.permute.xlu0 %1451 }
  0xd2   : > { %6238 = vst [vmem:[#allocation19_spill] sm:$0xff] %v5231_v33  ;;  %6241 = vst [vmem:[#allocation22_spill] sm:$0xff] %v5258_v11  ;;  %v879_v18 = vrot.slane %v874_v61, 4  ;;  %v893_v35 = vshll.u32 %v767_v45, 16  ;;  %v768_v5 = vsel %vm752_vm2, 65537, %v6230_v9  ;;  %v1585_v7 = vshrl.u32 %v1512_v36, 16 }
  0xd3   : > { %6240 = vst [vmem:[#allocation21_spill] sm:$0xff] %v5250_v1  ;;  %v5264_v39 = vsel %vm4942_vm7, %v6242_v23, %v877_v22  ;;  %v1588_v16 = vshll.u32 %v1512_v36, 16  ;;  %v5272_v32 = vsel %vm1686_vm0, %v4894_v43, 0  ;;  %v5277_v20 = vsel %vm1687_vm10, %v4896_v44, 0  ;;  %v5333_v11 = vld [vmem:[#allocation2 + $0x2c] sm:$0xf] }
  0xd4   : > { %v5282_v61 = vsel %vm1687_vm10, %v5266_v8, 0  ;;  %vm6244_vm1 = vcmp.ne.s16.totalorder %v4978_v6, 0  ;;  %v5289_v22 = vsel %vm4942_vm7, %v879_v18, %v886_v53  ;;  %v888_v43 = vrot.slane %v5200_v29, 4 }
  0xd5   : > { %6243 = vst [vmem:[#allocation23_spill] sm:$0xff] %v5282_v61  ;;  %v2005_v45 = vsel %vm6244_vm1, %v4803_v51, 0  ;;  %6245 = vst [vmem:[#allocation24_spill] sm:$0xff] %v5289_v22  ;;  %v1705_v44 = vsel %vm1688_vm15, %v4900_v46, 0  ;;  %v895_v48 = vor.u32 %v893_v35, %v5243_v37  ;;  %v1583_v13 = vrot.slane %v5198_v15, 4 }
  0xd6   : > { %v899_v36 = vshrl.u32 %v768_v5, 16  ;;  %vm6246_vm2 = vcmp.ne.s16.totalorder %v4982_v21, 0  ;;  %v1587_v29 = vrot.slane %v1585_v7, 6  ;;  %v1590_v23 = vrot.slane %v1588_v16, 7 }
  0xd7   : > { %v2006_v53 = vsel %vm6246_vm2, %v4805_v52, 0  ;;  %vm1481_vm1 = vcmp.eq.s32.totalorder %v1449_v19, 1  ;;  %v1706_v46 = vsel %vm1689_vm13, %v4902_v47, 0  ;;  %vm737_vm14 = vcmp.eq.s32.totalorder %v721_v34, 1 }
  0xd8   : > { %v5302_v18 = vcombine.low %v2005_v45, %v2006_v53  ;;  %vm1497_vm11 = vmpackc.low %vm1481_vm1, %vm1481_vm1  ;;  %vm1483_vm8 = vcmp.eq.s32.totalorder %v1455_v12, 1  ;;  %vm1482_vm12 = vcmp.eq.s32.totalorder %v1452_v31, 1  ;;  %v5310_v15 = vsel %vm4942_vm7, %v888_v43, %v895_v48 }
  0xd9   : > { %6248 = vst [vmem:[#allocation26_spill] sm:$0xff] %v5310_v15  ;;  %v902_v21 = vshll.u32 %v768_v5, 16  ;;  %vm6249_vm2 = vcmp.ne.s16.totalorder %v5029_v60, 0  ;;  %v1513_v19 = vsel %vm1497_vm11, 65537, %v6230_v9  ;;  %vm753_vm9 = vmpackc.low %vm737_vm14, %vm737_vm14  ;;  %v5318_v7 = vrot.slane %v899_v36, 7 }
  0xda   : > { %6247 = vst [vmem:[#allocation25_spill] sm:$0xff] %v5302_v18  ;;  %v5315_v35 = vsel %vm6249_vm2, %v4799_v49, 0  ;;  %v1595_v47 = vshrl.u32 %v1513_v19, 16  ;;  %v1598_v16 = vshll.u32 %v1513_v19, 16  ;;  %v769_v34 = vsel %vm753_vm9, 65537, %v6230_v9  ;;  %vm1499_vm1 = vmpackc.low %vm1483_vm8, %vm1483_vm8 }
  0xdb   : > { %6250 = vst [vmem:[#allocation27_spill] sm:$0xff] %v5315_v35  ;;  %v5321_v45 = vcombine.low %v1705_v44, %v1706_v46  ;;  %v1591_v43 = vor.u32 %v1590_v23, %v1587_v29  ;;  %v2476_v5 = vsel %vm1685_vm3, %v4808_v54, 0  ;;  %v908_v48 = vshrl.u32 %v769_v34, 16  ;;  %vm1498_vm2 = vmpackc.low %vm1482_vm12, %vm1482_vm12 }
  0xdc   : > { %v1597_v12 = vrot.slane %v1595_v47, 6  ;;  %v1600_v31 = vrot.slane %v1598_v16, 7  ;;  %v1515_v53 = vsel %vm1499_vm1, 65537, %v6230_v9  ;;  %v1514_v36 = vsel %vm1498_vm2, 65537, %v6230_v9 }
  0xdd   : > { %v2475_v19 = vsel %vm1684_vm5, %v4810_v55, 0  ;;  %v910_v6 = vrot.slane %v908_v48, 7  ;;  %v1615_v44 = vshrl.u32 %v1515_v53, 16  ;;  %v1618_v46 = vshll.u32 %v1515_v53, 16  ;;  %v1458_v53 = vpop.permute.xlu0 %1457 }
  0xde   : > { %v904_v29 = vor.u32 %v902_v21, %v5318_v7  ;;  %v906_v42 = vrot.slane %v5318_v7, 4  ;;  %v1605_v54 = vshrl.u32 %v1514_v36, 16  ;;  %v1608_v23 = vshll.u32 %v1514_v36, 16 }
  0xdf   : > { %v2477_v47 = vsel %vm1686_vm0, %v4799_v49, 0  ;;  %v2478_v24 = vsel %vm1687_vm10, %v4801_v50, 0  ;;  %v3870_v55 = vcombine.low %v2475_v19, %v2476_v5  ;;  %v915_v16 = vrot.slane %v910_v6, 4  ;;  %v5353_v49 = vld [vmem:[#allocation2 + $0x28] sm:$0xf] }
  0xe0   : > { %v5343_v48 = vsel %vm5075_vm6, %v1583_v13, %v1591_v43  ;;  %v2479_v21 = vsel %vm1688_vm15, %v4803_v51, 0  ;;  %v2480_v7 = vsel %vm1689_vm13, %v4805_v52, 0  ;;  %v5351_v59 = vor.u32 %v1600_v31, %v1597_v12  ;;  %v5360_v51 = vld [vmem:[#allocation2 + $0x40] sm:$0x1]  ;;  %v1461_v31 = vpop.permute.xlu1 %1460 }
  0xe1   : > { %vm6161_vm11 = vcmp.ne.s16.totalorder %v5289_v22, 0  ;;  %vm929_vm14 = vcmp.ne.s16.totalorder %v5310_v15, 0  ;;  %v1593_v50 = vrot.slane %v1591_v43, 4  ;;  %v1617_v30 = vrot.slane %v1615_v44, 6  ;;  %v5529_v15 = vld [vmem:[#allocation2 + $0x34] sm:$0xf] }
  0xe2   : > { %v1620_v13 = vrot.slane %v1618_v46, 7  ;;  %vm6251_vm0 = vcmp.ne.s16.totalorder %v5264_v39, 0  ;;  %v911_v5 = vshll.u32 %v769_v34, 16  ;;  %vm5362_vm8 = vcmp.ne.s16.totalorder %v915_v16, 0  ;;  %6269 = vst [vmem:[#allocation34_spill] sm:$0xff] %v5529_v15 }
  0xe3   : > { %v944_v27 = vsel %vm6251_vm0, %v5333_v11, 0  ;;  %v1607_v62 = vrot.slane %v1605_v54, 6  ;;  %v1610_v12 = vrot.slane %v1608_v23, 7  ;;  %v6254_v36 = vrot.slane %v5243_v37, 4 }
  0xe4   : > { %v3871_v19 = vcombine.low %v2477_v47, %v2478_v24  ;;  %v5372_v44 = vcombine.low %v2479_v21, %v2480_v7  ;;  %vm6256_vm5 = vcmp.ne.s16.totalorder %v5231_v33, 0  ;;  %vm1763_vm3 = vsmask.f32 6400 }
  0xe5   : > { %v5370_v43 = vsel %vm4942_vm7, %v6254_v36, %v904_v29  ;;  %v943_v34 = vsel %vm6256_vm5, %v5353_v49, 0  ;;  %vm6180_vm9 = vcmp.ne.s16.totalorder %v5343_v48, 0  ;;  %v5381_v46 = vsel %vm5075_vm6, %v1593_v50, %v5351_v59 }
  0xe6   : > { %6255 = vst [vmem:[#allocation28_spill] sm:$0xff] %v5370_v43  ;;  %v913_v37 = vor.u32 %v911_v5, %v910_v6  ;;  %v5383_v54 = vcombine.low %v943_v34, %v944_v27  ;;  %v5388_v29 = vsel %vm5362_vm8, %v5360_v51, 0  ;;  %v5390_v23 = vor.u32 %v1620_v13, %v1617_v30  ;;  %v1467_v13 = vpop.permute.xlu1 %1466  ;;  %v5415_v34 = vld [vmem:[#allocation2 + $0x34] sm:$0xf] }
  0xe7   : > { %v1031_v47 = vshrl.u32 %v5192_v3, 16  ;;  %v2538_v24 = vshrl.u32 %v3870_v55, 16  ;;  %v1603_v16 = vrot.slane %v5351_v59, 4  ;;  %v5394_v21 = vor.u32 %v1610_v12, %v1607_v62  ;;  %v1464_v62 = vpop.permute.xlu0 %1463  ;;  %v5407_v12 = vld [vmem:[#allocation2 + $0x30] sm:$0xf] }
  0xe8   : > { %v1035_v7 = vshll.u32 %v5383_v54, 16  ;;  %v2541_v50 = vshll.u32 %v3870_v55, 16  ;;  %vm1691_vm15 = vcmp.ne.s16.totalorder %v5381_v46, 0  ;;  %v2546_v27 = vshrl.u32 %v3871_v19, 16  ;;  %v4430_v46 = vld [vmem:[#allocation2 + $0x10] sm:$0xe] }
  0xe9   : > { %v2540_v6 = vrot.slane %v2538_v24, 1  ;;  %v2549_v5 = vshll.u32 %v3871_v19, 16  ;;  %v5400_v36 = vsel %vm4942_vm7, %v906_v42, %v913_v37  ;;  %v1033_v30 = vor.u32 %v1031_v47, %v5210_v41 }
  0xea   : > { %6257 = vst [vmem:[#allocation29_spill] sm:$0xff] %v5400_v36  ;;  %v5405_v59 = vrot.slane %v1035_v7, 1  ;;  %v1623_v55 = vrot.slane %v5390_v23, 4  ;;  %v5413_v19 = vsel %vm6180_vm9, %v4855_v25, 0  ;;  %v2543_v17 = vrot.slane %v2541_v50, 2 }
  0xeb   : > { %v2548_v42 = vrot.slane %v2546_v27, 1  ;;  %v1613_v37 = vrot.slane %v5394_v21, 4  ;;  %vm6258_vm7 = vsmask.f32 7424  ;;  %v2551_v47 = vrot.slane %v2549_v5, 2 }
  0xec   : > { %v1038_v41 = vsel %vm6258_vm7, %v1033_v30, %v5405_v59  ;;  %vm1485_vm13 = vcmp.eq.s32.totalorder %v1461_v31, 1  ;;  %vm6259_vm10 = vcmask 31744   ;;  %v2544_v24 = vor.u32 %v2543_v17, %v2540_v6 }
  0xed   : > { %4066 = vmatprep.mubr.msk.bf16.mxu1 %vm6259_vm10, %v1038_v41  ;;  %vm1501_vm12 = vmpackc.low %vm1485_vm13, %vm1485_vm13  ;;  %vm1484_vm1 = vcmp.eq.s32.totalorder %v1458_v53, 1  ;;  %vm1487_vm2 = vcmp.eq.s32.totalorder %v1467_v13, 1  ;;  %vm1486_vm0 = vcmp.eq.s32.totalorder %v1464_v62, 1  ;;  %v5421_v25 = vor.u32 %v2551_v47, %v2548_v42 }
  0xee   : > { %v1517_v7 = vsel %vm1501_vm12, 65537, %v6230_v9  ;;  %vm1500_vm5 = vmpackc.low %vm1484_vm1, %vm1484_vm1  ;;  %v945_v50 = vsel %vm6161_vm11, %v5407_v12, 0  ;;  %v946_v31 = vsel %vm929_vm14, %v5415_v34, 0  ;;  %vm6177_vm7 = vcmp.ne.s16.totalorder %v5370_v43, 0 }
  0xef   : > { %vm6162_vm13 = vcmp.ne.s16.totalorder %v5400_v36, 0  ;;  %v1635_v53 = vshrl.u32 %v1517_v7, 16  ;;  %v1638_v6 = vshll.u32 %v1517_v7, 16  ;;  %v1516_v27 = vsel %vm1500_vm5, 65537, %v6230_v9  ;;  %vm1503_vm10 = vmpackc.low %vm1487_vm2, %vm1487_vm2 }
  0xf0   : > { %v5433_v5 = vcombine.low %v945_v50, %v946_v31  ;;  %v2553_v30 = vsel %vm1763_vm3, %v2544_v24, %v5421_v25  ;;  %v1625_v13 = vshrl.u32 %v1516_v27, 16  ;;  %v1628_v17 = vshll.u32 %v1516_v27, 16  ;;  %vm1502_vm12 = vmpackc.low %vm1486_vm0, %vm1486_vm0 }
  0xf1   : > { %v1519_v42 = vsel %vm1503_vm10, 65537, %v6230_v9  ;;  %vm6260_vm1 = vcmask 31744   ;;  %v1637_v41 = vrot.slane %v1635_v53, 6  ;;  %v1640_v47 = vrot.slane %v1638_v6, 7 }
  0xf2   : > { %4148 = vmatprep.mubr.msk.bf16.mxu0 %vm6260_vm1, %v2553_v30  ;;  %v1655_v7 = vshrl.u32 %v1519_v42, 16  ;;  %v1658_v3 = vshll.u32 %v1519_v42, 16  ;;  %v5444_v50 = vsel %vm1691_vm15, %v4857_v26, 0  ;;  %v1627_v31 = vrot.slane %v1625_v13, 6 }
  0xf3   : > { %v1630_v24 = vrot.slane %v1628_v17, 7  ;;  %v1518_v27 = vsel %vm1502_vm12, 65537, %v6230_v9  ;;  %v5450_v62 = vsel %vm5075_vm6, %v1603_v16, %v5394_v21  ;;  %v1641_v61 = vor.u32 %v1640_v47, %v1637_v41  ;;  %v5464_v47 = vld [vmem:[#allocation2 + $0x38] sm:$0xf]  ;;  %vm6263_vm12 = vmmov %vm6260_vm1 }
  0xf4   : > { %v1657_v30 = vrot.slane %v1655_v7, 6  ;;  %v1645_v53 = vshrl.u32 %v1518_v27, 16  ;;  %v1660_v18 = vrot.slane %v1658_v3, 7  ;;  %v1648_v42 = vshll.u32 %v1518_v27, 16 }
  0xf5   : > { %v1631_v6 = vor.u32 %v1630_v24, %v1627_v31  ;;  %v1043_v1 = vshll.u32 %v5433_v5, 16  ;;  %v5456_v26 = vsel %vm5075_vm6, %v1613_v37, %v5390_v23  ;;  %v1039_v17 = vshrl.u32 %v5383_v54, 16  ;;  %v1473_v31 = vpop.permute.xlu1 %1472  ;;  %v1470_v54 = vpop.permute.xlu0 %1469  ;;  %v5469_v24 = vld [vmem:[#allocation2 + $0x3c] sm:$0xf] }
  0xf6   : > { %6261 = vst [vmem:[#allocation30_spill] sm:$0xff] %v5456_v26  ;;  %v1647_v13 = vrot.slane %v1645_v53, 6  ;;  %v2555_v35 = vshrl.u32 %v5372_v44, 16  ;;  %v1650_v41 = vrot.slane %v1648_v42, 7  ;;  %vm1692_vm2 = vcmp.ne.s16.totalorder %v5450_v62, 0 }
  0xf7   : > { %v5462_v16 = vsel %vm5075_vm6, %v1623_v55, %v1631_v6  ;;  %v1633_v21 = vrot.slane %v1631_v6, 4  ;;  %v1045_v3 = vrot.slane %v1043_v1, 1  ;;  %v1041_v7 = vor.u32 %v1039_v17, %v5405_v59  ;;  %v5492_v6 = vld [vmem:[#allocation2 + $0x30] sm:$0xf] }
  0xf8   : > { %v2557_v23 = vrot.slane %v2555_v35, 1  ;;  %v2558_v37 = vshll.u32 %v5372_v44, 16  ;;  %vm1693_vm0 = vcmp.ne.s16.totalorder %v5456_v26, 0  ;;  %v1643_v55 = vrot.slane %v1641_v61, 4  ;;  %6265 = vst [vmem:[#allocation32_spill] sm:$0xff] %v5492_v6 }
  0xf9   : > { %vm1694_vm5 = vcmp.ne.s16.totalorder %v5462_v16, 0  ;;  %v5473_v27 = vor.u32 %v1660_v18, %v1657_v30  ;;  %v5477_v1 = vsel %vm5075_vm6, %v1633_v21, %v1641_v61  ;;  %v1651_v53 = vor.u32 %v1650_v41, %v1647_v13  ;;  %v5487_v30 = vld [vmem:[#allocation2 + $0x28] sm:$0xf]  ;;  %v5500_v21 = vld [vmem:[#allocation2 + $0x2c] sm:$0xf] }
  0xfa   : > { %vm6262_vm10 = vsmask.f32 7424  ;;  %v2560_v59 = vrot.slane %v2558_v37, 2  ;;  %vm1489_vm1 = vcmp.eq.s32.totalorder %v1473_v31, 1  ;;  %vm1488_vm11 = vcmp.eq.s32.totalorder %v1470_v54, 1  ;;  %6264 = vst [vmem:[#allocation31_spill] sm:$0xff] %v5487_v30 }
  0xfb   : > { %v1046_v35 = vsel %vm6262_vm10, %v1041_v7, %v1045_v3  ;;  %v947_v44 = vsel %vm6177_vm7, %v5464_v47, 0  ;;  %v948_v18 = vsel %vm6162_vm13, %v5469_v24, 0  ;;  %v2483_v61 = vsel %vm1692_vm2, %v5487_v30, 0  ;;  %vm1505_vm10 = vmpackc.low %vm1489_vm1, %vm1489_vm1  ;;  %6266 = vst [vmem:[#allocation33_spill] sm:$0xff] %v5500_v21 }
  0xfc   : > { %4067 = vmatmul.mubr.msk.bf16.gmra.mrb[8].mxu1 %vm6263_vm12, %v1046_v35  ;;  %v5496_v42 = vsel %vm5075_vm6, %v1643_v55, %v1651_v53  ;;  %v5498_v13 = vor.u32 %v2560_v59, %v2557_v23  ;;  %v3787_v17 = vcombine.low %v947_v44, %v948_v18  ;;  %v2484_v41 = vsel %vm1693_vm0, %v5500_v21, 0  ;;  %vm1504_vm12 = vmpackc.low %vm1488_vm11, %vm1488_vm11 }
  0xfd   : > { %v2485_v7 = vsel %vm1694_vm5, %v5492_v6, 0  ;;  %v1663_v37 = vrot.slane %v5473_v27, 4  ;;  %v1521_v31 = vsel %vm1505_vm10, 65537, %v6230_v9  ;;  %vm6178_vm13 = vcmp.ne.s16.totalorder %v5477_v1, 0  ;;  %v5522_v6 = vld [vmem:[%s6128_s4 + $0xe] sm:$0x3] }
  0xfe   : > { %v1653_v23 = vrot.slane %v1651_v53, 4  ;;  %v1047_v54 = vshrl.u32 %v5433_v5, 16  ;;  %v6267_v55 = vcombine.low %v5388_v29, %v5388_v29  ;;  %vm1696_vm1 = vcmp.ne.s16.totalorder %v5496_v42, 0 }
  0xff   : > { %v2562_v59 = vsel %vm1763_vm3, %v5421_v25, %v5498_v13  ;;  %v1675_v44 = vshrl.u32 %v1521_v31, 16  ;;  %v1678_v18 = vshll.u32 %v1521_v31, 16  ;;  %vm6268_vm11 = vcmask 31744  }
 0x100   : > { %v1059_v35 = vshll.u32 %v6267_v55, 16  ;;  %4149 = vmatmul.mubr.msk.bf16.vlgmr.msra.gmra.mrb[0].mxu0 %vm6268_vm11, %v2562_v59  ;;  %v1520_v5 = vsel %vm1504_vm12, 65537, %v6230_v9  ;;  %v1049_v53 = vor.u32 %v1047_v54, %v1045_v3  ;;  %v1051_v29 = vshll.u32 %v3787_v17, 16  ;;  %vm6276_vm7 = vmmov %vm6268_vm11 }
 0x101   : > { %v1055_v55 = vshrl.u32 %v3787_v17, 16  ;;  %v1677_v21 = vrot.slane %v1675_v44, 6  ;;  %v1680_v30 = vrot.slane %v1678_v18, 7  ;;  %v1665_v36 = vshrl.u32 %v1520_v5, 16  ;;  %4165 = vmatpush3.bf16.msra.mxu0 %v4949_v58 }
 0x102   : > { %v1668_v43 = vshll.u32 %v1520_v5, 16  ;;  %v1053_v25 = vrot.slane %v1051_v29, 1  ;;  %v1061_v31 = vrot.slane %v1059_v35, 1  ;;  %v3873_v26 = vcombine.low %v5413_v19, %v5444_v50 }
 0x103   : > { %v3874_v22 = vcombine.low %v2483_v61, %v2484_v41  ;;  %vm6270_vm10 = vcmask 1041408   ;;  %v1681_v9 = vor.u32 %v1680_v30, %v1677_v21  ;;  %v1667_v3 = vrot.slane %v1665_v36, 6  ;;  %v2474_v61 = vld [vmem:[#allocation2 + $0x48] sm:$0x3] }
 0x104   : > { %4372 = vmatprep.subr.msk.bf16.mxu0 %vm6270_vm10, %v5522_v6  ;;  %v1670_v17 = vrot.slane %v1668_v43, 7  ;;  %v2486_v54 = vsel %vm6178_vm13, %v5529_v15, 0  ;;  %vm6271_vm12 = vsmask.f32 7424  ;;  %v1057_v59 = vor.u32 %v1055_v55, %v1053_v25  ;;  %v4424_v55 = vld [vmem:[#allocation2 + $0x14] sm:$0xf] }
 0x105   : > { %v1054_v58 = vsel %vm6271_vm12, %v1049_v53, %v1053_v25  ;;  %v2564_v35 = vshrl.u32 %v3873_v26, 16  ;;  %v2567_v44 = vshll.u32 %v3873_v26, 16  ;;  %v5540_v19 = vsel %vm5075_vm6, %v1653_v23, %v5473_v27  ;;  %vm6272_vm10 = vmmov %vm6271_vm12  ;;  %v5559_v25 = vld [vmem:[#allocation2 + $0x38] sm:$0xf] }
 0x106   : > { %v1683_v50 = vrot.slane %v1681_v9, 4  ;;  %v1671_v41 = vor.u32 %v1670_v17, %v1667_v3  ;;  %4070 = vmatprep.mubr.msk.bf16.mxu1 %vm6268_vm11, %v1054_v58  ;;  %v2573_v43 = vshrl.u32 %v3874_v22, 16  ;;  %v1062_v36 = vsel %vm6272_vm10, %v1057_v59, %v1061_v31  ;;  %6278 = vst [vmem:[#allocation36_spill] sm:$0xff] %v5559_v25  ;;  %vm6280_vm10 = vmmov %vm6276_vm7  ;;  %v5571_v3 = vld [vmem:[#allocation2 + $0x40] sm:$0xf] }
 0x107   : > { %v2566_v30 = vrot.slane %v2564_v35, 1  ;;  %v2569_v21 = vrot.slane %v2567_v44, 2  ;;  %v2576_v18 = vshll.u32 %v3874_v22, 16  ;;  %4071 = vmatmul.mubr.msk.bf16.gmra.mrb[12].mxu1 %vm6276_vm7, %v1062_v36  ;;  %v3875_v23 = vcombine.low %v2485_v7, %v2486_v54  ;;  %v5578_v35 = vld [vmem:[#allocation2 + $0x3c] sm:$0xf] }
 0x108   : > { %vm5544_vm12 = vcmp.ne.s16.totalorder %v1683_v50, 0  ;;  %v5550_v26 = vsel %vm5075_vm6, %v1663_v37, %v1671_v41  ;;  %v1673_v27 = vrot.slane %v1671_v41, 4  ;;  %vm6277_vm11 = vcmp.ne.s16.totalorder %v4964_v40, 0  ;;  %v6279_v37 = vld [vmem:[#allocation9_spill] sm:$0xff]  ;;  %6282 = vst [vmem:[#allocation37_spill] sm:$0xff] %v5578_v35  ;;  %v6286_v54 = vld [vmem:[#allocation8_spill] sm:$0xff] }
 0x109   : > { %6275 = vst [vmem:[#allocation35_spill] sm:$0xff] %v5550_v26  ;;  %v5557_v22 = vsel %vm6277_vm11, %v4424_v55, 0  ;;  %v2491_v31 = vsel %vm5544_vm12, %v2474_v61, 0  ;;  %4076 = vmatprep.mubr.msk.bf16.mxu1 %vm6280_vm10, %v6279_v37  ;;  %vm6181_vm7 = vcmp.ne.s16.totalorder %v5540_v19, 0  ;;  %vm6195_vm13 = vcmp.ne.s16.totalorder %v5550_v26, 0  ;;  %6281 = vst [vmem:[#allocation9_spill] sm:$0xff] %v5571_v3 }
 0x10a   : > { %v5568_v7 = vsel %vm5075_vm6, %v1673_v27, %v1681_v9  ;;  %v2575_v17 = vrot.slane %v2573_v43, 1  ;;  %v2487_v58 = vsel %vm1696_vm1, %v5559_v25, 0  ;;  %v3878_v59 = vcombine.low %v2491_v31, %v2491_v31  ;;  %v5580_v61 = vld [vmem:[#allocation2 + $0x44] sm:$0xf]  ;;  %vm6285_vm6 = vmmov %vm6280_vm10  ;;  %v5638_v31 = vld [vmem:[#allocation2 + $0x2c] sm:$0xf] }
 0x10b   : > { %vm6179_vm11 = vcmp.ne.s16.totalorder %v5568_v7, 0  ;;  %v2570_v44 = vor.u32 %v2569_v21, %v2566_v30  ;;  %v2578_v28 = vrot.slane %v2576_v18, 2  ;;  %v2582_v9 = vshrl.u32 %v3875_v23, 16  ;;  %6283 = vst [vmem:[#allocation38_spill] sm:$0xff] %v5580_v61 }
 0x10c   : > { %v2585_v50 = vshll.u32 %v3875_v23, 16  ;;  %v2489_v41 = vsel %vm6195_vm13, %v5571_v3, 0  ;;  %v2488_v43 = vsel %vm6181_vm7, %v5578_v35, 0  ;;  %v6284_v36 = vcombine.low %v5011_v56, %v5013_v57  ;;  %v4425_v3 = vld [vmem:[#allocation2 + $0x1c] sm:$0xf] }
 0x10d   : > { %v2490_v30 = vsel %vm6179_vm11, %v5580_v61, 0  ;;  %v2571_v21 = vsel %vm1763_vm3, %v5498_v13, %v2570_v44  ;;  %v2579_v18 = vor.u32 %v2578_v28, %v2575_v17  ;;  %v2584_v23 = vrot.slane %v2582_v9, 1  ;;  %v6288_v13 = vld [vmem:[#allocation10_spill] sm:$0xff]  ;;  %vm6289_vm11 = vmmov %vm6285_vm6 }
 0x10e   : > { %v1257_v27 = vrot.slane %v6284_v36, 1  ;;  %v2587_v55 = vrot.slane %v2585_v50, 2  ;;  %4152 = vmatprep.mubr.msk.bf16.mxu0 %vm6285_vm6, %v2571_v21  ;;  %v3876_v37 = vcombine.low %v2487_v58, %v2488_v43  ;;  %vm6287_vm10 = vcmask 1046528   ;;  %v5603_v36 = vld [vmem:[%s6128_s4 + $0x6] sm:$0x3] }
 0x10f   : > { %v3877_v57 = vcombine.low %v2489_v41, %v2490_v30  ;;  %v2580_v53 = vsel %vm1763_vm3, %v2570_v44, %v2579_v18  ;;  %4077 = vmatmul.mubr.msk.bf16.vlgmr.msra.gmra.mrb[0].mxu1 %vm6289_vm11, %v6288_v13  ;;  %v6290_v28 = vcombine.low %v5031_v63, %v5033_v2  ;;  %v2609_v58 = vshrl.u32 %v3878_v59, 16  ;;  %vm6292_vm11 = vmmov %vm6285_vm6  ;;  %v1409_v13 = vld [vmem:[#allocation2 + $0x40] sm:$0x3] }
 0x110   : > { %v1258_v29 = vsel %vm6287_vm10, %v6286_v54, %v1257_v27  ;;  %v2588_v17 = vor.u32 %v2587_v55, %v2584_v23  ;;  %4153 = vmatmul.mubr.msk.bf16.gmra.mrb[4].mxu0 %vm6285_vm6, %v2580_v53  ;;  %v6291_v54 = vld [vmem:[#allocation11_spill] sm:$0xff]  ;;  %v2591_v50 = vshrl.u32 %v3876_v37, 16  ;;  %v2594_v41 = vshll.u32 %v3876_v37, 16 }
 0x111   : > { %v1259_v9 = vrot.slane %v6290_v28, 1  ;;  %4093 = vmatpush3.bf16.msra.mxu1 %v6291_v54  ;;  %v2600_v43 = vshrl.u32 %v3877_v57, 16  ;;  %v2603_v30 = vshll.u32 %v3877_v57, 16  ;;  %v5616_v44 = vsel %vm6180_vm9, %v5011_v56, 0  ;;  %4080 = vmatprep.mubr.msk.bf16.mxu1 %vm6292_vm11, %v1258_v29  ;;  %v5625_v57 = vld [vmem:[#allocation2 + $0x50] sm:$0x1] }
 0x112   : > { %v2589_v21 = vsel %vm1763_vm3, %v2579_v18, %v2588_v17  ;;  %v2612_v63 = vshll.u32 %v3878_v59, 16  ;;  %v3803_v2 = vcombine.low %v5353_v49, %v5333_v11  ;;  %vm6293_vm10 = vcmask 1041408   ;;  %6294 = vst [vmem:[#allocation8_spill] sm:$0xff] %v5625_v57 }
 0x113   : > { %4367 = vmatprep.subr.msk.bf16.mxu1 %vm6293_vm10, %v5603_v36  ;;  %4156 = vmatprep.mubr.msk.bf16.mxu0 %vm6285_vm6, %v2589_v21  ;;  %v2593_v53 = vrot.slane %v2591_v50, 1  ;;  %v2596_v23 = vrot.slane %v2594_v41, 2  ;;  %v2602_v55 = vrot.slane %v2600_v43, 1  ;;  %v2605_v37 = vrot.slane %v2603_v30, 2  ;;  %v6298_v41 = vld [vmem:[#allocation14_spill] sm:$0xff]  ;;  %v6299_v43 = vld [vmem:[#allocation13_spill] sm:$0xff]  ;;  %vm6301_vm10 = vmmov %vm6285_vm6 }
 0x114   : > { %vm6295_vm9 = vcmask 1046528   ;;  %v1261_v18 = vrot.slane %v3803_v2, 1  ;;  %vm6296_vm11 = vcmp.ne.s16.totalorder %v5029_v60, 0  ;;  %vm6297_vm7 = vcmp.ne.s16.totalorder %v4964_v40, 0  ;;  %v5636_v21 = vld [vmem:[#allocation2 + $0x28] sm:$0xf] }
 0x115   : > { %v1260_v56 = vsel %vm6295_vm9, %v1257_v27, %v1259_v9  ;;  %v2776_v29 = vsel %vm6296_vm11, %v5240_v14, 0  ;;  %v2777_v59 = vsel %vm6297_vm7, %v5266_v8, 0  ;;  %v2597_v28 = vor.u32 %v2596_v23, %v2593_v53  ;;  %vm6300_vm7 = vmmov %vm6285_vm6 }
 0x116   : > { %v2606_v54 = vor.u32 %v2605_v37, %v2602_v55  ;;  %v2611_v50 = vrot.slane %v2609_v58, 1  ;;  %v3888_v30 = vcombine.low %v6299_v43, %v6298_v41  ;;  %v2614_v27 = vrot.slane %v2612_v63, 2 }
 0x117   : > { %v1262_v2 = vsel %vm6295_vm9, %v1259_v9, %v1261_v18  ;;  %v5641_v60 = vcombine.low %v2776_v29, %v2777_v59  ;;  %v3804_v40 = vcombine.low %v5407_v12, %v5415_v34  ;;  %v5647_v53 = vsel %vm1691_vm15, %v4425_v3, 0  ;;  %v4426_v9 = vld [vmem:[#allocation2 + $0x20] sm:$0xf]  ;;  %4081 = vmatmul.mubr.msk.bf16.gmra.mrb[4].mxu1 %vm6300_vm7, %v1260_v56  ;;  %vm6305_vm7 = vmmov %vm6285_vm6 }
 0x118   : > { %v5652_v58 = vsel %vm5362_vm8, %v5625_v57, 0  ;;  %v2598_v23 = vsel %vm1763_vm3, %v2588_v17, %v2597_v28  ;;  %v2607_v63 = vsel %vm1763_vm3, %v2597_v28, %v2606_v54  ;;  %v5658_v55 = vsel %vm1692_vm2, %v4426_v9, 0  ;;  %4084 = vmatprep.mubr.msk.bf16.mxu1 %vm6285_vm6, %v1262_v2 }
 0x119   : > { %v5663_v37 = vsel %vm1694_vm5, %v5353_v49, 0  ;;  %v1717_v3 = vsel %vm5544_vm12, %v1409_v13, 0  ;;  %v2839_v29 = vshll.u32 %v3888_v30, 16  ;;  %4157 = vmatmul.mubr.msk.bf16.gmra.mrb[8].mxu0 %vm6301_vm10, %v2598_v23  ;;  %v1263_v17 = vrot.slane %v3804_v40, 1  ;;  %v6303_v49 = vld [vmem:[#allocation15_spill] sm:$0xff] }
 0x11a   : > { %v3805_v59 = vcombine.low %v5464_v47, %v5469_v24  ;;  %vm6302_vm11 = vcmp.ne.s16.totalorder %v5092_v4, 0  ;;  %vm6304_vm9 = vcmp.ne.s16.totalorder %v6303_v49, 0  ;;  %v5681_v56 = vsel %vm1696_vm1, %v5407_v12, 0  ;;  %4160 = vmatprep.mubr.msk.bf16.mxu0 %vm6305_vm7, %v2607_v63  ;;  %v5699_v63 = vld [vmem:[#allocation2 + $0x30] sm:$0xf] }
 0x11b   : > { %v2780_v28 = vsel %vm6302_vm11, %v5636_v21, 0  ;;  %v2781_v41 = vsel %vm6304_vm9, %v5638_v31, 0  ;;  %v2615_v13 = vor.u32 %v2614_v27, %v2611_v50  ;;  %v2841_v43 = vrot.slane %v2839_v29, 1  ;;  %v6307_v29 = vld [vmem:[#allocation12_spill] sm:$0xff]  ;;  %vm6310_vm9 = vmmov %vm6305_vm7 }
 0x11c   : > { %v2844_v2 = vshll.u32 %v5641_v60, 16  ;;  %v5685_v40 = vcombine.low %v1717_v3, %v1717_v3  ;;  %v2837_v23 = vshrl.u32 %v3888_v30, 16  ;;  %v1265_v9 = vrot.slane %v3805_v59, 1 }
 0x11d   : > { %v3817_v61 = vcombine.low %v5272_v32, %v5277_v20  ;;  %v5692_v25 = vsel %vm6195_vm13, %v5464_v47, 0  ;;  %v5694_v12 = vcombine.low %v2780_v28, %v2781_v41  ;;  %v3806_v50 = vcombine.low %v5360_v51, %v5360_v51  ;;  %v5704_v20 = vld [vmem:[#allocation2 + $0x34] sm:$0xf] }
 0x11e   : > { %v1765_v27 = vshrl.u32 %v5253_v0, 16  ;;  %v2842_v3 = vor.u32 %v2841_v43, %v2837_v23  ;;  %vm6306_vm10 = vcmask 1046528   ;;  %v2852_v59 = vshll.u32 %v6307_v29, 16  ;;  %v5710_v23 = vld [vmem:[#allocation2 + $0x3c] sm:$0xf] }
 0x11f   : > { %v1264_v30 = vsel %vm6306_vm10, %v1261_v18, %v1263_v17  ;;  %v1768_v32 = vshll.u32 %v5253_v0, 16  ;;  %v2616_v47 = vsel %vm1763_vm3, %v2606_v54, %v2615_v13  ;;  %v2846_v28 = vrot.slane %v2844_v2, 1  ;;  %vm6309_vm11 = vmmov %vm6306_vm10  ;;  %v5712_v18 = vld [vmem:[#allocation2 + $0x38] sm:$0xf] }
 0x120   : > { %vm6308_vm6 = vcmask 1041408   ;;  %v1266_v51 = vsel %vm6309_vm11, %v1263_v17, %v1265_v9  ;;  %v1767_v57 = vrot.slane %v1765_v27, 1  ;;  %v1773_v38 = vshrl.u32 %v3817_v61, 16  ;;  %4085 = vmatmul.mubr.msk.bf16.gmra.mrb[8].mxu1 %vm6310_vm9, %v1264_v30 }
 0x121   : > { %v3132_v41 = vsel %vm6308_vm6, %v5522_v6, 0  ;;  %v1770_v35 = vrot.slane %v1768_v32, 2  ;;  %v1776_v43 = vshll.u32 %v3817_v61, 16  ;;  %v2860_v0 = vshll.u32 %v5694_v12, 16  ;;  %v6312_v6 = vld [vmem:[#allocation18_spill] sm:$0xff]  ;;  %vm6314_vm6 = vmmov %vm6310_vm9 }
 0x122   : > { %v1267_v15 = vrot.slane %v3806_v50, 1  ;;  %vm6311_vm7 = vcmp.ne.s16.totalorder %v5127_v10, 0  ;;  %vm6313_vm10 = vcmp.ne.s16.totalorder %v6312_v6, 0  ;;  %4161 = vmatmul.mubr.msk.bf16.gmra.mrb[12].mxu0 %vm6314_vm6, %v2616_v47  ;;  %vm6315_vm11 = vsmask.f32 7424  ;;  %vm6316_vm13 = vmmov %vm6314_vm6 }
 0x123   : > { %v2782_v54 = vsel %vm6311_vm7, %v5699_v63, 0  ;;  %v2783_v17 = vsel %vm6313_vm10, %v5704_v20, 0  ;;  %v2847_v61 = vsel %vm6315_vm11, %v2842_v3, %v2846_v28  ;;  %4088 = vmatprep.mubr.msk.bf16.mxu1 %vm6316_vm13, %v1266_v51  ;;  %v1775_v13 = vrot.slane %v1773_v38, 1  ;;  %vm6317_vm9 = vmmov %vm6314_vm6 }
 0x124   : > { %v1778_v2 = vrot.slane %v1776_v43, 2  ;;  %v3892_v27 = vcombine.low %v2782_v54, %v2783_v17  ;;  %v2848_v30 = vshrl.u32 %v5641_v60, 16  ;;  %4166 = vmatprep.mubr.msk.bf16.mxu0 %vm6317_vm9, %v2847_v61  ;;  %v2854_v50 = vrot.slane %v2852_v59, 1  ;;  %v5742_v17 = vld [vmem:[#allocation2 + $0x44] sm:$0xf]  ;;  %vm6323_vm6 = vmmov %vm6315_vm11 }
 0x125   : > { %vm6318_vm7 = vcmp.ne.s16.totalorder %v5264_v39, 0  ;;  %v6319_v6 = vshrl.u32 %v5321_v45, 16  ;;  %v1771_v47 = vor.u32 %v1770_v35, %v1767_v57  ;;  %vm6320_vm13 = vcmp.ne.s16.totalorder %v5231_v33, 0  ;;  %vm6325_vm11 = vmmov %vm6317_vm9 }
 0x126   : > { %v2785_v32 = vsel %vm6318_vm7, %v5710_v23, 0  ;;  %v1779_v26 = vor.u32 %v1778_v2, %v1775_v13  ;;  %v2868_v3 = vshll.u32 %v3892_v27, 16  ;;  %v2784_v38 = vsel %vm6320_vm13, %v5712_v18, 0  ;;  %v5746_v13 = vld [vmem:[#allocation2 + $0x40] sm:$0xf]  ;;  %vm6326_vm7 = vmmov %vm6323_vm6 }
 0x127   : > { %v1784_v10 = vrot.slane %v6319_v6, 1  ;;  %v2856_v51 = vshrl.u32 %v6307_v29, 16  ;;  %v5736_v60 = vcombine.low %v2784_v38, %v2785_v32  ;;  %v6321_v59 = vshll.u32 %v5321_v45, 16  ;;  %vm6327_vm13 = vmmov %vm6317_vm9 }
 0x128   : > { %v3819_v54 = vcombine.low %v5616_v44, %v5647_v53  ;;  %v2850_v6 = vor.u32 %v2848_v30, %v2846_v28  ;;  %v2862_v35 = vrot.slane %v2860_v0, 1  ;;  %vm6322_vm10 = vcmask 1046528  }
 0x129   : > { %v1787_v43 = vrot.slane %v6321_v59, 2  ;;  %v1268_v57 = vsel %vm6322_vm10, %v1265_v9, %v1267_v15  ;;  %v1780_v61 = vsel %vm1763_vm3, %v1771_v47, %v1779_v26  ;;  %v2858_v2 = vor.u32 %v2856_v51, %v2854_v50 }
 0x12a   : > { %v1791_v32 = vshrl.u32 %v3819_v54, 16  ;;  %v1794_v38 = vshll.u32 %v3819_v54, 16  ;;  %v2855_v45 = vsel %vm6323_vm6, %v2850_v6, %v2854_v50  ;;  %v2864_v59 = vshrl.u32 %v5694_v12, 16  ;;  %4089 = vmatmul.mubr.msk.bf16.gmra.mrb[12].mxu1 %vm6325_vm11, %v1268_v57  ;;  %v6328_v50 = vld [vmem:[#allocation24_spill] sm:$0xff]  ;;  %vm6334_vm6 = vmmov %vm6317_vm9 }
 0x12b   : > { %v1788_v29 = vor.u32 %v1787_v43, %v1784_v10  ;;  %v2870_v33 = vrot.slane %v2868_v3, 1  ;;  %v2787_v53 = vsel %vm929_vm14, %v5742_v17, 0  ;;  %v2876_v15 = vshll.u32 %v5736_v60, 16  ;;  %v5759_v10 = vld [vmem:[%s6128_s4 + $0x10] sm:$0x3]  ;;  %4167 = vmatmul.mubr.msk.bf16.vlgmr.msra.gmra.mrb[0].mxu0 %vm6317_vm9, %v2855_v45  ;;  %4094 = vmatprep.mubr.msk.bf16.mxu1 %vm6327_vm13, %v1780_v61  ;;  %v6330_v3 = vld [vmem:[#allocation5_spill] sm:$0xff] }
 0x12c   : > { %v1793_v28 = vrot.slane %v1791_v32, 1  ;;  %v1796_v0 = vrot.slane %v1794_v38, 2  ;;  %v2863_v12 = vsel %vm6326_vm7, %v2858_v2, %v2862_v35  ;;  %v2866_v30 = vor.u32 %v2864_v59, %v2862_v35  ;;  %4183 = vmatpush3.bf16.msra.mxu0 %v3132_v41  ;;  %v4427_v35 = vld [vmem:[#allocation2 + $0x24] sm:$0xf]  ;;  %v6403_v61 = vld [vmem:[#allocation36_spill] sm:$0xff] }
 0x12d   : > { %v1789_v9 = vsel %vm1763_vm3, %v1779_v26, %v1788_v29  ;;  %vm6329_vm10 = vcmp.ne.s16.totalorder %v6328_v50, 0  ;;  %v6331_v26 = vld [vmem:[#allocation7_spill] sm:$0xff]  ;;  %4170 = vmatprep.mubr.msk.bf16.mxu0 %vm6334_vm6, %v2863_v12  ;;  %v2872_v6 = vshrl.u32 %v3892_v27, 16  ;;  %vm6335_vm11 = vcmask 1041408  }
 0x12e   : > { %v2786_v47 = vsel %vm6329_vm10, %v5746_v13, 0  ;;  %v6332_v51 = vrot.slane %v6331_v26, 4  ;;  %v2156_v57 = vsel %vm6335_vm11, %v5603_v36, 0  ;;  %vm6336_vm9 = vcmask 27648   ;;  %vm6340_vm10 = vmmov %vm6335_vm11  ;;  %v5791_v26 = vld [vmem:[#allocation2 + $0x48] sm:$0xf] }
 0x12f   : > { %v3894_v2 = vcombine.low %v2786_v47, %v2787_v53  ;;  %v1710_v32 = vsel %vm1693_vm0, %v4427_v35, 0  ;;  %v2871_v38 = vsel %vm6326_vm7, %v2866_v30, %v2870_v33  ;;  %vm6339_vm13 = vcmp.ne.s16.totalorder %v5540_v19, 0  ;;  %4373 = vmatprep.subr.msk.bf16.mxu0 %vm6340_vm10, %v5759_v10 }
 0x130   : > { %v578_v54 = vsel %vm4665_vm4, %v6332_v51, %v6330_v3  ;;  %v3820_v45 = vcombine.low %v5658_v55, %v1710_v32  ;;  %vm6338_vm4 = vcmp.ne.s16.totalorder %v5477_v1, 0  ;;  %v1714_v27 = vsel %vm6339_vm13, %v5415_v34, 0  ;;  %v6345_v32 = vld [vmem:[#allocation28_spill] sm:$0xff] }
 0x131   : > { %584 = vst.msk [vmem:[#allocation2 + $0x4c] sm:$0xf] %vm6336_vm9, %v578_v54  ;;  %v1712_v41 = vsel %vm6338_vm4, %v5333_v11, 0  ;;  %v2874_v36 = vor.u32 %v2872_v6, %v2870_v33  ;;  %v2878_v59 = vrot.slane %v2876_v15, 1  ;;  %v1797_v53 = vor.u32 %v1796_v0, %v1793_v28 }
 0x132   : > { %v3821_v12 = vcombine.low %v5663_v37, %v1712_v41  ;;  %v2880_v30 = vshrl.u32 %v5736_v60, 16  ;;  %v1800_v47 = vshrl.u32 %v3820_v45, 16  ;;  %v1803_v55 = vshll.u32 %v3820_v45, 16  ;;  %v5796_v37 = vld [vmem:[#allocation2 + $0x48] sm:$0x1] }
 0x133   : > { %v3822_v3 = vcombine.low %v5681_v56, %v1714_v27  ;;  %v2884_v11 = vshll.u32 %v3894_v2, 16  ;;  %vm6341_vm6 = vcmp.ne.s16.totalorder %v5568_v7, 0  ;;  %vm6342_vm11 = vcmask 31744  }
 0x134   : > { %v1809_v51 = vshrl.u32 %v3821_v12, 16  ;;  %v1812_v43 = vshll.u32 %v3821_v12, 16  ;;  %v1716_v34 = vsel %vm6341_vm6, %v5469_v24, 0  ;;  %v1802_v33 = vrot.slane %v1800_v47, 1  ;;  %4095 = vmatmul.mubr.msk.bf16.vlgmr.msra.gmra.mrb[0].mxu1 %vm6342_vm11, %v1789_v9  ;;  %vm6343_vm9 = vmmov %vm6342_vm11 }
 0x135   : > { %v1805_v15 = vrot.slane %v1803_v55, 2  ;;  %v1818_v28 = vshrl.u32 %v3822_v3, 16  ;;  %v1821_v0 = vshll.u32 %v3822_v3, 16  ;;  %v1798_v60 = vsel %vm1763_vm3, %v1788_v29, %v1797_v53  ;;  %4171 = vmatmul.mubr.msk.bf16.gmra.mrb[4].mxu0 %vm6343_vm9, %v2871_v38  ;;  %vm6344_vm4 = vmmov %vm6343_vm9  ;;  %4111 = vmatpush3.bf16.msra.mxu1 %v2156_v57 }
 0x136   : > { %v1811_v56 = vrot.slane %v1809_v51, 1  ;;  %v1814_v54 = vrot.slane %v1812_v43, 2  ;;  %v3823_v6 = vcombine.low %v5692_v25, %v1716_v34  ;;  %v2879_v35 = vsel %vm6326_vm7, %v2874_v36, %v2878_v59  ;;  %4098 = vmatprep.mubr.msk.bf16.mxu1 %vm6344_vm4, %v1798_v60  ;;  %vm6347_vm10 = vmmov %vm6344_vm4  ;;  %v6348_v25 = vld [vmem:[#allocation29_spill] sm:$0xff] }
 0x137   : > { %vm6346_vm13 = vcmp.ne.s16.totalorder %v6345_v32, 0  ;;  %v1820_v41 = vrot.slane %v1818_v28, 1  ;;  %v1823_v9 = vrot.slane %v1821_v0, 2  ;;  %4174 = vmatprep.mubr.msk.bf16.mxu0 %vm6347_vm10, %v2879_v35  ;;  %v2886_v29 = vrot.slane %v2884_v11, 1  ;;  %v4428_v51 = vld [vmem:[%s6128_s4 + $0x8] sm:$0x3] }
 0x138   : > { %v5804_v24 = vld [vmem:[#allocation2 + $0x4c] sm:$0xf]  ;;  %v2788_v45 = vsel %vm6346_vm13, %v5791_v26, 0  ;;  %vm6349_vm6 = vcmp.ne.s16.totalorder %v6348_v25, 0  ;;  %v1806_v27 = vor.u32 %v1805_v15, %v1802_v33  ;;  %v1815_v36 = vor.u32 %v1814_v54, %v1811_v56  ;;  %v4429_v56 = vld [vmem:[#allocation2 + $0x14] sm:$0xf] }
 0x139   : > { %v2789_v38 = vsel %vm6349_vm6, %v5804_v24, 0  ;;  %v1824_v47 = vor.u32 %v1823_v9, %v1820_v41  ;;  %v1827_v55 = vshrl.u32 %v3823_v6, 16  ;;  %v1830_v3 = vshll.u32 %v3823_v6, 16 }
 0x13a   : > { %v3895_v12 = vcombine.low %v2788_v45, %v2789_v38  ;;  %vm6350_vm11 = vcmask 1041408   ;;  %vm6351_vm9 = vcmp.ne.s16.totalorder %v5343_v48, 0  ;;  %v5825_v11 = vsel %vm1691_vm15, %v5638_v31, 0  ;;  %vm6353_vm15 = vmmov %vm6344_vm4 }
 0x13b   : > { %4369 = vmatprep.subr.msk.bf16.mxu1 %vm6350_vm11, %v4428_v51  ;;  %v5820_v57 = vsel %vm6351_vm9, %v5636_v21, 0  ;;  %v5830_v43 = vsel %vm5362_vm8, %v5796_v37, 0  ;;  %v2888_v34 = vshrl.u32 %v3894_v2, 16  ;;  %v3896_v33 = vcombine.low %v5652_v58, %v5652_v58  ;;  %vm6352_vm8 = vmmov %vm6326_vm7  ;;  %v4431_v51 = vld [vmem:[#allocation2 + $0x20] sm:$0xf] }
 0x13c   : > { %v2882_v15 = vor.u32 %v2880_v30, %v2878_v59  ;;  %v2892_v28 = vshll.u32 %v3895_v12, 16  ;;  %v1825_v48 = vsel %vm1763_vm3, %v1815_v36, %v1824_v47  ;;  %v1807_v60 = vsel %vm1763_vm3, %v1797_v53, %v1806_v27  ;;  %v6354_v53 = vld [vmem:[#allocation27_spill] sm:$0xff]  ;;  %vm6355_vm7 = vmmov %vm6344_vm4 }
 0x13d   : > { %v2890_v0 = vor.u32 %v2888_v34, %v2886_v29  ;;  %v3906_v54 = vcombine.low %v4430_v46, %v4429_v56  ;;  %v3907_v6 = vcombine.low %v5240_v14, %v5266_v8  ;;  %v1829_v35 = vrot.slane %v1827_v55, 1  ;;  %4099 = vmatmul.mubr.msk.bf16.gmra.mrb[4].mxu1 %vm6353_vm15, %v1807_v60  ;;  %vm6356_vm4 = vmmov %vm6352_vm8  ;;  %v3247_v55 = vld [vmem:[#allocation2 + $0x50] sm:$0x3]  ;;  %v4432_v34 = vld [vmem:[#allocation2 + $0x24] sm:$0xf] }
 0x13e   : > { %v2894_v52 = vrot.slane %v2892_v28, 1  ;;  %v1832_v45 = vrot.slane %v1830_v3, 2  ;;  %v1836_v2 = vshrl.u32 %v5685_v40, 16  ;;  %v2887_v58 = vsel %vm6352_vm8, %v2882_v15, %v2886_v29  ;;  %vm6357_vm13 = vmmov %vm6355_vm7  ;;  %v6358_v29 = vld [vmem:[#allocation21_spill] sm:$0xff]  ;;  %v4433_v46 = vld [vmem:[#allocation2 + $0x20] sm:$0xf] }
 0x13f   : > { %v1816_v59 = vsel %vm1763_vm3, %v1806_v27, %v1815_v36  ;;  %v1839_v30 = vshll.u32 %v5685_v40, 16  ;;  %v3835_v41 = vcombine.low %v6354_v53, %v5557_v22  ;;  %v3842_v9 = vcombine.low %v5830_v43, %v5830_v43  ;;  %4175 = vmatmul.mubr.msk.bf16.gmra.mrb[8].mxu0 %vm6355_vm7, %v2887_v58  ;;  %vm6359_vm10 = vmmov %vm6355_vm7 }
 0x140   : > { %v5850_v14 = vsel %vm1692_vm2, %v5699_v63, 0  ;;  %v2895_v8 = vsel %vm6356_vm4, %v2890_v0, %v2894_v52  ;;  %4102 = vmatprep.mubr.msk.bf16.mxu1 %vm6357_vm13, %v1816_v59  ;;  %v2066_v38 = vshll.u32 %v6358_v29, 16  ;;  %v2896_v40 = vshrl.u32 %v3895_v12, 16  ;;  %vm6363_vm11 = vmmov %vm6356_vm4 }
 0x141   : > { %4178 = vmatprep.mubr.msk.bf16.mxu0 %vm6359_vm10, %v2895_v8  ;;  %v2900_v22 = vshll.u32 %v3896_v33, 16  ;;  %v3090_v27 = vrot.slane %v3906_v54, 1  ;;  %v3091_v36 = vrot.slane %v3907_v6, 1  ;;  %v5860_v62 = vsel %vm1694_vm5, %v5712_v18, 0  ;;  %v4434_v6 = vld [vmem:[#allocation2 + $0x24] sm:$0xf]  ;;  %vm6364_vm9 = vmmov %vm6355_vm7 }
 0x142   : > { %v1833_v3 = vor.u32 %v1832_v45, %v1829_v35  ;;  %v3908_v15 = vcombine.low %v4431_v51, %v4432_v34  ;;  %v1838_v28 = vrot.slane %v1836_v2, 1  ;;  %v2898_v0 = vor.u32 %v2896_v40, %v2894_v52  ;;  %v6372_v34 = vld [vmem:[#allocation31_spill] sm:$0xff] }
 0x143   : > { %v1841_v60 = vrot.slane %v1839_v30, 2  ;;  %v2071_v56 = vshll.u32 %v3835_v41, 16  ;;  %vm6360_vm2 = vcmp.ne.s16.totalorder %v5092_v4, 0  ;;  %v2068_v33 = vrot.slane %v2066_v38, 1  ;;  %v6365_v30 = vld [vmem:[#allocation25_spill] sm:$0xff] }
 0x144   : > { %v2007_v12 = vsel %vm6360_vm2, %v4433_v46, 0  ;;  %v3909_v54 = vcombine.low %v5636_v21, %v5638_v31  ;;  %v3910_v16 = vcombine.low %v5699_v63, %v5704_v20  ;;  %vm6361_vm5 = vcmp.ne.s16.totalorder %v6303_v49, 0  ;;  %vm6379_vm2 = vmmov %vm6363_vm11 }
 0x145   : > { %v2008_v35 = vsel %vm6361_vm5, %v4434_v6, 0  ;;  %v5873_v52 = vsel %vm1696_vm1, %v5746_v13, 0  ;;  %v3264_v4 = vsel %vm5544_vm12, %v3247_v55, 0  ;;  %v2902_v45 = vrot.slane %v2900_v22, 1  ;;  %4103 = vmatmul.mubr.msk.bf16.gmra.mrb[8].mxu1 %vm6364_vm9, %v1825_v48  ;;  %vm6366_vm1 = vmmov %vm6355_vm7 }
 0x146   : > { %vm6362_vm6 = vcmask 1046528   ;;  %v1834_v31 = vsel %vm1763_vm3, %v1824_v47, %v1833_v3  ;;  %v3093_v21 = vrot.slane %v3908_v15, 1  ;;  %v2064_v63 = vshrl.u32 %v6358_v29, 16  ;;  %vm6367_vm12 = vmmov %vm6366_vm1  ;;  %v6368_v29 = vld [vmem:[#allocation35_spill] sm:$0xff]  ;;  %v6373_v15 = vld [vmem:[#allocation17_spill] sm:$0xff] }
 0x147   : > { %v3092_v2 = vsel %vm6362_vm6, %v3090_v27, %v3091_v36  ;;  %v3837_v58 = vcombine.low %v2007_v12, %v2008_v35  ;;  %v2903_v49 = vsel %vm6363_vm11, %v2898_v0, %v2902_v45  ;;  %v1842_v59 = vor.u32 %v1841_v60, %v1838_v28  ;;  %4106 = vmatprep.mubr.msk.bf16.mxu1 %vm6367_vm12, %v1834_v31  ;;  %vm6370_vm15 = vmmov %vm6366_vm1  ;;  %v6375_v0 = vld [vmem:[#allocation33_spill] sm:$0xff]  ;;  %v6376_v60 = vld [vmem:[#allocation18_spill] sm:$0xff] }
 0x148   : > { %v2073_v42 = vrot.slane %v2071_v56, 1  ;;  %v2079_v53 = vshll.u32 %v6365_v30, 16  ;;  %v5883_v8 = vcombine.low %v3264_v4, %v3264_v4  ;;  %4179 = vmatmul.mubr.msk.bf16.gmra.mrb[12].mxu0 %vm6366_vm1, %v2903_v49  ;;  %v2069_v5 = vor.u32 %v2068_v33, %v2064_v63  ;;  %vm6378_vm10 = vmmov %vm6362_vm6  ;;  %v6384_v45 = vld [vmem:[#allocation16_spill] sm:$0xff]  ;;  %v6385_v49 = vld [vmem:[#allocation34_spill] sm:$0xff] }
 0x149   : > { %v3095_v47 = vrot.slane %v3909_v54, 1  ;;  %v3097_v38 = vrot.slane %v3910_v16, 1  ;;  %vm6369_vm8 = vcmp.ne.s16.totalorder %v6368_v29, 0  ;;  %4184 = vmatprep.mubr.msk.bf16.mxu0 %vm6370_vm15, %v3092_v2  ;;  %vm6371_vm7 = vcmask 1041408   ;;  %vm6380_vm5 = vmmov %vm6362_vm6  ;;  %v6382_v54 = vld [vmem:[#allocation23_spill] sm:$0xff]  ;;  %v6383_v16 = vld [vmem:[#allocation22_spill] sm:$0xff] }
 0x14a   : > { %v5890_v40 = vsel %vm6369_vm8, %v5791_v26, 0  ;;  %v3415_v48 = vsel %vm6371_vm7, %v5759_v10, 0  ;;  %v2075_v22 = vshrl.u32 %v3835_v41, 16  ;;  %v3911_v27 = vcombine.low %v5712_v18, %v5710_v23  ;;  %vm6381_vm6 = vmmov %vm6380_vm5 }
 0x14b   : > { %v2087_v55 = vshll.u32 %v3837_v58, 16  ;;  %v3912_v51 = vcombine.low %v5746_v13, %v5742_v17  ;;  %vm6374_vm4 = vcmp.ne.s16.totalorder %v6373_v15, 0  ;;  %vm6377_vm13 = vcmp.ne.s16.totalorder %v6376_v60, 0  ;;  %vm6387_vm9 = vmmov %vm6366_vm1 }
 0x14c   : > { %v2009_v28 = vsel %vm6374_vm4, %v6372_v34, 0  ;;  %v2010_v56 = vsel %vm6377_vm13, %v6375_v0, 0  ;;  %v3094_v46 = vsel %vm6378_vm10, %v3091_v36, %v3093_v21  ;;  %v1843_v10 = vsel %vm1763_vm3, %v1833_v3, %v1842_v59  ;;  %vm6388_vm12 = vmmov %vm6366_vm1 }
 0x14d   : > { %v2077_v41 = vor.u32 %v2075_v22, %v2073_v42  ;;  %v2081_v12 = vrot.slane %v2079_v53, 1  ;;  %v2074_v18 = vsel %vm6379_vm2, %v2069_v5, %v2073_v42  ;;  %v3096_v33 = vsel %vm6380_vm5, %v3093_v21, %v3095_v47  ;;  %4107 = vmatmul.mubr.msk.bf16.gmra.mrb[12].mxu1 %vm6387_vm9, %v1843_v10  ;;  %vm6389_vm8 = vmmov %vm6379_vm2  ;;  %v6390_v22 = vld [vmem:[#allocation32_spill] sm:$0xff] }
 0x14e   : > { %v3098_v13 = vsel %vm6381_vm6, %v3095_v47, %v3097_v38  ;;  %v3925_v6 = vcombine.low %v6383_v16, %v6382_v54  ;;  %v2083_v35 = vshrl.u32 %v6365_v30, 16  ;;  %v5913_v4 = vcombine.low %v2009_v28, %v2010_v56  ;;  %4112 = vmatprep.mubr.msk.bf16.mxu1 %vm6388_vm12, %v2074_v18  ;;  %vm6393_vm7 = vmmov %vm6366_vm1 }
 0x14f   : > { %v3311_v2 = vshrl.u32 %v6384_v45, 16  ;;  %v3314_v36 = vshll.u32 %v6384_v45, 16  ;;  %v2089_v3 = vrot.slane %v2087_v55, 1  ;;  %v3099_v31 = vrot.slane %v3911_v27, 1  ;;  %v6391_v27 = vld [vmem:[#allocation19_spill] sm:$0xff]  ;;  %vm6394_vm4 = vmmov %vm6380_vm5  ;;  %v6400_v45 = vld [vmem:[#allocation37_spill] sm:$0xff] }
 0x150   : > { %v3101_v63 = vrot.slane %v3912_v51, 1  ;;  %vm6386_vm11 = vcmp.ne.s16.totalorder %v5264_v39, 0  ;;  %v3319_v53 = vshrl.u32 %v3925_v6, 16  ;;  %v3322_v5 = vshll.u32 %v3925_v6, 16  ;;  %4185 = vmatmul.mubr.msk.bf16.vlgmr.msra.gmra.mrb[0].mxu0 %vm6366_vm1, %v3094_v46  ;;  %vm6395_vm13 = vmmov %vm6394_vm4 }
 0x151   : > { %v2012_v21 = vsel %vm6386_vm11, %v6385_v49, 0  ;;  %v3313_v59 = vrot.slane %v3311_v2, 1  ;;  %v3316_v42 = vrot.slane %v3314_v36, 2  ;;  %v2082_v30 = vsel %vm6389_vm8, %v2077_v41, %v2081_v12  ;;  %4201 = vmatpush3.bf16.msra.mxu0 %v3415_v48  ;;  %4188 = vmatprep.mubr.msk.bf16.mxu0 %vm6393_vm7, %v3096_v33  ;;  %vm6398_vm10 = vmmov %vm6379_vm2 }
 0x152   : > { %v2085_v47 = vor.u32 %v2083_v35, %v2081_v12  ;;  %v2091_v29 = vshrl.u32 %v3837_v58, 16  ;;  %vm6392_vm15 = vcmp.ne.s16.totalorder %v6391_v27, 0  ;;  %v2095_v39 = vshll.u32 %v5913_v4, 16  ;;  %v6396_v58 = vld [vmem:[#allocation20_spill] sm:$0xff]  ;;  %vm6401_vm2 = vmmov %vm6366_vm1 }
 0x153   : > { %v2011_v55 = vsel %vm6392_vm15, %v6390_v22, 0  ;;  %v3913_v51 = vcombine.low %v5791_v26, %v5804_v24  ;;  %v3321_v34 = vrot.slane %v3319_v53, 1  ;;  %v3324_v15 = vrot.slane %v3322_v5, 2  ;;  %vm6408_vm6 = vmmov %vm6366_vm1 }
 0x154   : > { %v3100_v28 = vsel %vm6394_vm4, %v3097_v38, %v3099_v31  ;;  %v3102_v0 = vsel %vm6395_vm13, %v3099_v31, %v3101_v63  ;;  %v5933_v60 = vcombine.low %v2011_v55, %v2012_v21  ;;  %v6397_v56 = vshrl.u32 %v6396_v58, 16  ;;  %v6405_v21 = vld [vmem:[#allocation38_spill] sm:$0xff]  ;;  %vm6410_vm11 = vmmov %vm6366_vm1 }
 0x155   : > { %v2090_v48 = vsel %vm6398_vm10, %v2085_v47, %v2089_v3  ;;  %v2093_v10 = vor.u32 %v2091_v29, %v2089_v3  ;;  %v3317_v41 = vor.u32 %v3316_v42, %v3313_v59  ;;  %v3325_v12 = vor.u32 %v3324_v15, %v3321_v34  ;;  %4113 = vmatmul.mubr.msk.bf16.vlgmr.msra.gmra.mrb[0].mxu1 %vm6401_vm2, %v2082_v30  ;;  %v6409_v47 = vld [vmem:[#allocation4_spill] sm:$0xff]  ;;  %vm6411_vm9 = vmmov %vm6394_vm4 }
 0x156   : > { %v3330_v46 = vrot.slane %v6397_v56, 1  ;;  %v2099_v18 = vshrl.u32 %v5913_v4, 16  ;;  %v6399_v26 = vshll.u32 %v6396_v58, 16  ;;  %v3927_v38 = vcombine.low %v5820_v57, %v5825_v11  ;;  %v6402_v57 = vld [vmem:[#allocation8_spill] sm:$0xff]  ;;  %4116 = vmatprep.mubr.msk.bf16.mxu1 %vm6408_vm6, %v2090_v48  ;;  %4219 = vmatpush3.bf16.msra.mxu1 %v6409_v47  ;;  %vm6416_vm7 = vmmov %vm6389_vm8 }
 0x157   : > { %v3257_v54 = vsel %vm1693_vm0, %v5704_v20, 0  ;;  %v2097_v16 = vrot.slane %v2095_v39, 1  ;;  %v5946_v6 = vrot.slane %v3913_v51, 1  ;;  %v5949_v35 = vsel %vm1763_vm3, %v3317_v41, %v3325_v12  ;;  %vm6418_vm13 = vmmov %vm6401_vm2 }
 0x158   : > { %v3333_v33 = vrot.slane %v6399_v26, 2  ;;  %v2014_v4 = vsel %vm929_vm14, %v6400_v45, 0  ;;  %v2103_v2 = vshll.u32 %v5933_v60, 16  ;;  %v3337_v3 = vshrl.u32 %v3927_v38, 16  ;;  %vm6407_vm14 = vmmov %vm6366_vm1 }
 0x159   : > { %v3340_v31 = vshll.u32 %v3927_v38, 16  ;;  %v3914_v20 = vcombine.low %v6402_v57, %v6402_v57  ;;  %vm6404_vm0 = vcmp.ne.s16.totalorder %v6328_v50, 0  ;;  %vm6406_vm5 = vcmp.ne.s16.totalorder %v6348_v25, 0  ;;  %4189 = vmatmul.mubr.msk.bf16.gmra.mrb[4].mxu0 %vm6407_vm14, %v3098_v13  ;;  %v6412_v25 = vld [vmem:[#allocation9_spill] sm:$0xff]  ;;  %vm6419_vm10 = vmmov %vm6401_vm2 }
 0x15a   : > { %v3334_v36 = vor.u32 %v3333_v33, %v3330_v46  ;;  %v2013_v11 = vsel %vm6404_vm0, %v6403_v61, 0  ;;  %v2016_v59 = vsel %vm6406_vm5, %v6405_v21, 0  ;;  %v3928_v44 = vcombine.low %v5850_v14, %v3257_v54  ;;  %4192 = vmatprep.mubr.msk.bf16.mxu0 %vm6410_vm11, %v3100_v28  ;;  %vm6420_vm0 = vmmov %vm6401_vm2 }
 0x15b   : > { %v3840_v42 = vcombine.low %v2013_v11, %v2014_v4  ;;  %v3339_v5 = vrot.slane %v3337_v3, 1  ;;  %v3342_v30 = vrot.slane %v3340_v31, 2  ;;  %v3104_v50 = vsel %vm6411_vm9, %v3101_v63, %v5946_v6  ;;  %vm6421_vm5 = vmmov %vm6411_vm9 }
 0x15c   : > { %v5968_v53 = vsel %vm1763_vm3, %v3325_v12, %v3334_v36  ;;  %vm6413_vm1 = vcmp.ne.s16.totalorder %v6345_v32, 0  ;;  %v3346_v13 = vshrl.u32 %v3928_v44, 16  ;;  %v3349_v29 = vshll.u32 %v3928_v44, 16  ;;  %vm6422_vm14 = vmmov %vm6416_vm7 }
 0x15d   : > { %v2015_v14 = vsel %vm6413_vm1, %v6412_v25, 0  ;;  %v2105_v27 = vrot.slane %v2103_v2, 1  ;;  %v3343_v39 = vor.u32 %v3342_v30, %v3339_v5  ;;  %vm6414_vm12 = vcmp.ne.s16.totalorder %v5477_v1, 0  ;;  %vm6423_vm6 = vmmov %vm6420_vm0 }
 0x15e   : > { %v5977_v55 = vcombine.low %v2015_v14, %v2016_v59  ;;  %v3259_v51 = vsel %vm6414_vm12, %v5710_v23, 0  ;;  %v2098_v34 = vsel %vm6389_vm8, %v2093_v10, %v2097_v16  ;;  %v3348_v15 = vrot.slane %v3346_v13, 1  ;;  %vm6424_vm11 = vmmov %vm6416_vm7 }
 0x15f   : > { %v3351_v28 = vrot.slane %v3349_v29, 2  ;;  %v3929_v63 = vcombine.low %v5860_v62, %v3259_v51  ;;  %v2101_v58 = vor.u32 %v2099_v18, %v2097_v16  ;;  %v2111_v56 = vshll.u32 %v3840_v42, 16  ;;  %4117 = vmatmul.mubr.msk.bf16.gmra.mrb[4].mxu1 %vm6418_vm13, %v2098_v34  ;;  %vm6425_vm9 = vmmov %vm6420_vm0 }
 0x160   : > { %v5985_v32 = vsel %vm1763_vm3, %v3334_v36, %v3343_v39  ;;  %vm6415_vm15 = vcmp.ne.s16.totalorder %v5540_v19, 0  ;;  %v3105_v10 = vrot.slane %v3914_v20, 1  ;;  %v2119_v26 = vshll.u32 %v5977_v55, 16  ;;  %vm6426_vm1 = vmmov %vm6420_vm0 }
 0x161   : > { %v3261_v46 = vsel %vm6415_vm15, %v5742_v17, 0  ;;  %v3352_v48 = vor.u32 %v3351_v28, %v3348_v15  ;;  %v3355_v41 = vshrl.u32 %v3929_v63, 16  ;;  %v3358_v12 = vshll.u32 %v3929_v63, 16  ;;  %4193 = vmatmul.mubr.msk.bf16.gmra.mrb[8].mxu0 %vm6419_vm10, %v3102_v0  ;;  %vm6427_vm12 = vmmov %vm6420_vm0  ;;  %v6428_v28 = vld [vmem:[#allocation6_spill] sm:$0xff] }
 0x162   : > { %v3930_v1 = vcombine.low %v5873_v52, %v3261_v46  ;;  %v2106_v23 = vsel %vm6416_vm7, %v2101_v58, %v2105_v27  ;;  %vm6417_vm4 = vcmp.ne.s16.totalorder %v5568_v7, 0  ;;  %v2107_v52 = vshrl.u32 %v5933_v60, 16  ;;  %4196 = vmatprep.mubr.msk.bf16.mxu0 %vm6420_vm0, %v3104_v50  ;;  %vm6429_vm8 = vmmov %vm6421_vm5 }
 0x163   : > { %v3263_v62 = vsel %vm6417_vm4, %v5804_v24, 0  ;;  %v3353_v18 = vsel %vm1763_vm3, %v3343_v39, %v3352_v48  ;;  %v3357_v19 = vrot.slane %v3355_v41, 1  ;;  %v3360_v17 = vrot.slane %v3358_v12, 2  ;;  %4120 = vmatprep.mubr.msk.bf16.mxu1 %vm6401_vm2, %v2106_v23  ;;  %vm6430_vm15 = vmmov %vm6416_vm7 }
 0x164   : > { %v3364_v33 = vshrl.u32 %v3930_v1, 16  ;;  %v2113_v38 = vrot.slane %v2111_v56, 1  ;;  %v3367_v54 = vshll.u32 %v3930_v1, 16  ;;  %v3931_v16 = vcombine.low %v5890_v40, %v3263_v62  ;;  %vm6431_vm7 = vmmov %vm6420_vm0  ;;  %v6053_v1 = vld [vmem:[%s6129_s5] ss:$0 sm:$0xff] }
 0x165   : > { %v3361_v7 = vor.u32 %v3360_v17, %v3357_v19  ;;  %v3382_v4 = vshrl.u32 %v5883_v8, 16  ;;  %v3385_v2 = vshll.u32 %v5883_v8, 16  ;;  %v2115_v36 = vshrl.u32 %v3840_v42, 16  ;;  %vm6433_vm4 = vmmov %vm6420_vm0 }
 0x166   : > { %v3366_v24 = vrot.slane %v3364_v33, 1  ;;  %v3369_v3 = vrot.slane %v3367_v54, 2  ;;  %v3373_v31 = vshrl.u32 %v3931_v16, 16  ;;  %v3376_v0 = vshll.u32 %v3931_v16, 16  ;;  %vm6434_vm13 = vmmov %vm6420_vm0 }
 0x167   : > { %v2121_v57 = vrot.slane %v2119_v26, 1  ;;  %v3362_v20 = vsel %vm1763_vm3, %v3352_v48, %v3361_v7  ;;  %v3384_v60 = vrot.slane %v3382_v4, 1  ;;  %v3387_v11 = vrot.slane %v3385_v2, 2  ;;  %vm6435_vm10 = vmmov %vm6421_vm5 }
 0x168   : > { %v2109_v59 = vor.u32 %v2107_v52, %v2105_v27  ;;  %v3370_v44 = vor.u32 %v3369_v3, %v3366_v24  ;;  %v3375_v40 = vrot.slane %v3373_v31, 1  ;;  %v3378_v5 = vrot.slane %v3376_v0, 2  ;;  %vm6436_vm2 = vmmov %vm6421_vm5 }
 0x169   : > { %v3106_v30 = vsel %vm6421_vm5, %v5946_v6, %v3105_v10  ;;  %v2117_v47 = vor.u32 %v2115_v36, %v2113_v38  ;;  %v3857_v8 = vcombine.low %v6390_v22, %v6385_v49  ;;  %v3388_v42 = vor.u32 %v3387_v11, %v3384_v60  ;;  %vm6437_vm5 = vmmov %vm6420_vm0 }
 0x16a   : > { %v2114_v50 = vsel %vm6422_vm14, %v2109_v59, %v2113_v38  ;;  %v3371_v14 = vsel %vm1763_vm3, %v3361_v7, %v3370_v44  ;;  %v3379_v13 = vor.u32 %v3378_v5, %v3375_v40  ;;  %4197 = vmatmul.mubr.msk.bf16.gmra.mrb[12].mxu0 %vm6425_vm9, %v3106_v30  ;;  %v2123_v6 = vshrl.u32 %v5977_v55, 16  ;;  %vm6438_vm14 = vmmov %vm6420_vm0 }
 0x16b   : > { %4121 = vmatmul.mubr.msk.bf16.gmra.mrb[8].mxu1 %vm6423_vm6, %v2114_v50  ;;  %v2122_v29 = vsel %vm6424_vm11, %v2117_v47, %v2121_v57  ;;  %v2127_v49 = vshll.u32 %v3842_v9, 16  ;;  %4202 = vmatprep.mubr.msk.bf16.mxu0 %vm6427_vm12, %v5949_v35  ;;  %v2326_v39 = vrot.slane %v3857_v8, 1  ;;  %v3858_v15 = vcombine.low %v6403_v61, %v6400_v45  ;;  %vm6439_vm6 = vmmov %vm6420_vm0 }
 0x16c   : > { %4124 = vmatprep.mubr.msk.bf16.mxu1 %vm6426_vm1, %v2122_v29  ;;  %v3380_v22 = vsel %vm1763_vm3, %v3370_v44, %v3379_v13  ;;  %v3389_v27 = vsel %vm1763_vm3, %v3379_v13, %v3388_v42  ;;  %v2125_v51 = vor.u32 %v2123_v6, %v2121_v57  ;;  %v3859_v43 = vcombine.low %v6412_v25, %v6405_v21  ;;  %vm6432_vm3 = vmmov %vm6420_vm0 }
 0x16d   : > { %v2129_v34 = vrot.slane %v2127_v49, 1  ;;  %v2327_v55 = vsel %vm6429_vm8, %v6428_v28, %v2326_v39  ;;  %v2328_v35 = vrot.slane %v3858_v15, 1  ;;  %v3860_v63 = vcombine.low %v5796_v37, %v5796_v37  ;;  %vm6440_vm11 = vmmov %vm6436_vm2 }
 0x16e   : > { %v2330_v45 = vrot.slane %v3859_v43, 1  ;;  %vm6441_vm9 = vmmov %vm6420_vm0 }
 0x16f   : > { %v2130_v9 = vsel %vm6430_vm15, %v2125_v51, %v2129_v34  ;;  %v2329_v61 = vsel %vm6435_vm10, %v2326_v39, %v2328_v35  ;;  %vm6442_vm1 = vmmov %vm6420_vm0  ;;  %vm3610_vm15 = vcmask 60416  }
 0x170   : > { %v2331_v21 = vsel %vm6436_vm2, %v2328_v35, %v2330_v45  ;;  %vm6443_vm12 = vmmov %vm6420_vm0 }
 0x171   : > { %vm6444_vm8 = vmmov %vm6420_vm0 }
 0x172   : > { %4203 = vmatmul.mubr.msk.bf16.vlgmr.msra.gmra.mrb[0].mxu0 %vm6432_vm3, %v5968_v53  ;;  %v2332_v53 = vrot.slane %v3860_v63, 1 }
 0x173   : > { %4125 = vmatmul.mubr.msk.bf16.gmra.mrb[12].mxu1 %vm6431_vm7, %v2130_v9  ;;  %4206 = vmatprep.mubr.msk.bf16.mxu0 %vm6434_vm13, %v5985_v32 }
 0x174   : > { %4138 = vmatprep.mubr.msk.bf16.mxu1 %vm6433_vm4, %v2327_v55  ;;  %v2333_v25 = vsel %vm6440_vm11, %v2330_v45, %v2332_v53 }
 0x17a   : > { %4207 = vmatmul.mubr.msk.bf16.gmra.mrb[4].mxu0 %vm6437_vm5, %v3353_v18 }
 0x17b   : > { %4139 = vmatmul.mubr.msk.bf16.vlgmr.msra.gmra.mrb[8].mxu1 %vm6420_vm0, %v2329_v61  ;;  %4210 = vmatprep.mubr.msk.bf16.mxu0 %vm6439_vm6, %v3362_v20 }
 0x17c   : > { %4142 = vmatprep.mubr.msk.bf16.mxu1 %vm6438_vm14, %v2331_v21 }
 0x182   : > { %4211 = vmatmul.mubr.msk.bf16.gmra.mrb[8].mxu0 %vm6442_vm1, %v3371_v14 }
 0x183   : > { %4143 = vmatmul.mubr.msk.bf16.gmra.mrb[12].mxu1 %vm6441_vm9, %v2333_v25  ;;  %4214 = vmatprep.mubr.msk.bf16.mxu0 %vm6443_vm12, %v3380_v22 }
 0x18a   : > { %4215 = vmatmul.mubr.msk.bf16.gmra.mrb[12].mxu0 %vm6444_vm8, %v3389_v27 }
 0x228   : > { %v4114_v37 = vpop.f32.mrb[0].mxu1 }
 0x229   : > { %v2192_v58 = vpop.f32.mrb[1].mxu1  ;;  %v4220_v23 = vadd.f32 %v4114_v37, %v6053_v1 }
 0x22a   : > { %v4115_v56 = vpop.f32.mrb[2].mxu1  ;;  %v4222_v10 = vadd.f32 %v6053_v1, %v2192_v58 }
 0x22b   : > { %v2195_v32 = vpop.f32.mrb[3].mxu1  ;;  %v4224_v62 = vadd.f32 %v4115_v56, %v6053_v1 }
 0x22c   : > { %v4226_v17 = vadd.f32 %v6053_v1, %v2195_v32 }
 0x232   : > { %v4118_v46 = vpop.f32.mrb[4].mxu1 }
 0x233   : > { %v2208_v48 = vpop.f32.mrb[5].mxu1  ;;  %v4228_v31 = vadd.f32 %v4118_v46, %v6053_v1 }
 0x234   : > { %v4119_v41 = vpop.f32.mrb[6].mxu1  ;;  %v4230_v20 = vadd.f32 %v6053_v1, %v2208_v48 }
 0x235   : > { %v2211_v12 = vpop.f32.mrb[7].mxu1  ;;  %v4232_v44 = vadd.f32 %v4119_v41, %v6053_v1 }
 0x236   : > { %v4234_v47 = vadd.f32 %v6053_v1, %v2211_v12 }
 0x245   : > { %v4204_v26 = vpop.f32.mrb[0].mxu0 }
 0x246   : > { %v4221_v18 = vadd.f32 %v4220_v23, %v4204_v26  ;;  %v3451_v19 = vpop.f32.mrb[1].mxu0 }
 0x247   : > { %v4223_v33 = vadd.f32 %v4222_v10, %v3451_v19  ;;  %v4205_v52 = vpop.f32.mrb[2].mxu0 }
 0x248   : > { %v3532_v38 = vmax.f32 %v4221_v18, 0.0  ;;  %v4225_v54 = vadd.f32 %v4224_v62, %v4205_v52  ;;  %v3454_v16 = vpop.f32.mrb[3].mxu0 }
 0x249   : > { %v3530_v7 = vmax.f32 %v4223_v33, 0.0  ;;  %v4227_v24 = vadd.f32 %v4226_v17, %v3454_v16 }
 0x24a   : > { %v3961_v4 = vpack.c.bf16 %v3532_v38, %v3532_v38  ;;  %v3533_v2 = vmax.f32 %v4225_v54, 0.0 }
 0x24b   : > { %v3959_v36 = vpack.c.bf16 %v3530_v7, %v3530_v7  ;;  %v3531_v3 = vmax.f32 %v4227_v24, 0.0 }
 0x24c   : > { %3613 = vst.msk [vmem:[%s6063_s16 + $0x8] sm:$0xf] %vm3610_vm15, %v3961_v4  ;;  %v3962_v0 = vpack.c.bf16 %v3533_v2, %v3533_v2 }
 0x24d   : > { %3611 = vst.msk [vmem:[%s6063_s16] sm:$0xf] %vm3610_vm15, %v3959_v36  ;;  %v3960_v60 = vpack.c.bf16 %v3531_v3, %v3531_v3  ;;  %v4208_v11 = vpop.f32.mrb[4].mxu0 }
 0x24e   : > { %v4140_v57 = vpop.f32.mrb[8].mxu1  ;;  %3614 = vst.msk [vmem:[%s6063_s16 + $0xc] sm:$0xf] %vm3610_vm15, %v3962_v0  ;;  %v4229_v40 = vadd.f32 %v4228_v31, %v4208_v11  ;;  %v3467_v5 = vpop.f32.mrb[5].mxu0 }
 0x24f   : > { %v2427_v59 = vpop.f32.mrb[9].mxu1  ;;  %3612 = vst.msk [vmem:[%s6063_s16 + $0x4] sm:$0xf] %vm3610_vm15, %v3960_v60  ;;  %v4231_v8 = vadd.f32 %v4230_v20, %v3467_v5  ;;  %v4209_v42 = vpop.f32.mrb[6].mxu0  ;;  %v4236_v34 = vadd.f32 %v4140_v57, %v6053_v1 }
 0x250   : > { %v4141_v30 = vpop.f32.mrb[10].mxu1  ;;  %v3536_v14 = vmax.f32 %v4229_v40, 0.0  ;;  %v4233_v13 = vadd.f32 %v4232_v44, %v4209_v42  ;;  %v3470_v29 = vpop.f32.mrb[7].mxu0  ;;  %v4238_v55 = vadd.f32 %v6053_v1, %v2427_v59 }
 0x251   : > { %v2430_v50 = vpop.f32.mrb[11].mxu1  ;;  %v3534_v6 = vmax.f32 %v4231_v8, 0.0  ;;  %v4235_v49 = vadd.f32 %v4234_v47, %v3470_v29  ;;  %v4240_v45 = vadd.f32 %v4141_v30, %v6053_v1 }
 0x252   : > { %v3965_v22 = vpack.c.bf16 %v3536_v14, %v3536_v14  ;;  %v3537_v27 = vmax.f32 %v4233_v13, 0.0  ;;  %v4242_v53 = vadd.f32 %v6053_v1, %v2430_v50 }
 0x253   : > { %v3963_v39 = vpack.c.bf16 %v3534_v6, %v3534_v6  ;;  %v3535_v51 = vmax.f32 %v4235_v49, 0.0 }
 0x254   : > { %3617 = vst.msk [vmem:[%s6063_s16 + $0x18] sm:$0xf] %vm3610_vm15, %v3965_v22  ;;  %v3966_v15 = vpack.c.bf16 %v3537_v27, %v3537_v27 }
 0x255   : > { %3615 = vst.msk [vmem:[%s6063_s16 + $0x10] sm:$0xf] %vm3610_vm15, %v3963_v39  ;;  %v3964_v43 = vpack.c.bf16 %v3535_v51, %v3535_v51  ;;  %v4212_v9 = vpop.f32.mrb[8].mxu0 }
 0x256   : > { %v4144_v28 = vpop.f32.mrb[12].mxu1  ;;  %3618 = vst.msk [vmem:[%s6063_s16 + $0x1c] sm:$0xf] %vm3610_vm15, %v3966_v15  ;;  %v4237_v61 = vadd.f32 %v4236_v34, %v4212_v9  ;;  %v3483_v63 = vpop.f32.mrb[9].mxu0 }
 0x257   : > { %v2443_v35 = vpop.f32.mrb[13].mxu1  ;;  %3616 = vst.msk [vmem:[%s6063_s16 + $0x14] sm:$0xf] %vm3610_vm15, %v3964_v43  ;;  %v4239_v25 = vadd.f32 %v4238_v55, %v3483_v63  ;;  %v4213_v37 = vpop.f32.mrb[10].mxu0  ;;  %v4244_v62 = vadd.f32 %v4144_v28, %v6053_v1 }
 0x258   : > { %v4145_v21 = vpop.f32.mrb[14].mxu1  ;;  %v3540_v56 = vmax.f32 %v4237_v61, 0.0  ;;  %v4241_v32 = vadd.f32 %v4240_v45, %v4213_v37  ;;  %v3486_v46 = vpop.f32.mrb[11].mxu0  ;;  %v4246_v19 = vadd.f32 %v6053_v1, %v2443_v35 }
 0x259   : > { %v2446_v58 = vpop.f32.mrb[15].mxu1  ;;  %v3538_v48 = vmax.f32 %v4239_v25, 0.0  ;;  %v4243_v41 = vadd.f32 %v4242_v53, %v3486_v46  ;;  %v4248_v52 = vadd.f32 %v4145_v21, %v6053_v1 }
 0x25a   : > { %v3969_v12 = vpack.c.bf16 %v3540_v56, %v3540_v56  ;;  %v3541_v23 = vmax.f32 %v4241_v32, 0.0  ;;  %v4250_v16 = vadd.f32 %v6053_v1, %v2446_v58 }
 0x25b   : > { %v3967_v10 = vpack.c.bf16 %v3538_v48, %v3538_v48  ;;  %v3539_v26 = vmax.f32 %v4243_v41, 0.0 }
 0x25c   : > { %3621 = vst.msk [vmem:[%s6063_s16 + $0x28] sm:$0xf] %vm3610_vm15, %v3969_v12  ;;  %v3970_v18 = vpack.c.bf16 %v3541_v23, %v3541_v23 }
 0x25d   : > { %3619 = vst.msk [vmem:[%s6063_s16 + $0x20] sm:$0xf] %vm3610_vm15, %v3967_v10  ;;  %v3968_v17 = vpack.c.bf16 %v3539_v26, %v3539_v26  ;;  %v4216_v33 = vpop.f32.mrb[12].mxu0 }
 0x25e   : > { %3622 = vst.msk [vmem:[%s6063_s16 + $0x2c] sm:$0xf] %vm3610_vm15, %v3970_v18  ;;  %v4245_v38 = vadd.f32 %v4244_v62, %v4216_v33  ;;  %v3499_v54 = vpop.f32.mrb[13].mxu0 }
 0x25f   : > { %3620 = vst.msk [vmem:[%s6063_s16 + $0x24] sm:$0xf] %vm3610_vm15, %v3968_v17  ;;  %v4247_v7 = vadd.f32 %v4246_v19, %v3499_v54  ;;  %v4217_v24 = vpop.f32.mrb[14].mxu0 }
 0x260   : > { %v3544_v4 = vmax.f32 %v4245_v38, 0.0  ;;  %v4249_v2 = vadd.f32 %v4248_v52, %v4217_v24  ;;  %v3502_v36 = vpop.f32.mrb[15].mxu0 }
 0x261   : > { %v3542_v3 = vmax.f32 %v4247_v7, 0.0  ;;  %v4251_v31 = vadd.f32 %v4250_v16, %v3502_v36 }
 0x262   : > { %v3973_v0 = vpack.c.bf16 %v3544_v4, %v3544_v4  ;;  %v3545_v57 = vmax.f32 %v4249_v2, 0.0 }
 0x263   : > { %v3971_v20 = vpack.c.bf16 %v3542_v3, %v3542_v3  ;;  %v3543_v60 = vmax.f32 %v4251_v31, 0.0 }
 0x264   : > { %3625 = vst.msk [vmem:[%s6063_s16 + $0x38] sm:$0xf] %vm3610_vm15, %v3973_v0  ;;  %v3974_v11 = vpack.c.bf16 %v3545_v57, %v3545_v57 }
 0x265   : > { %3623 = vst.msk [vmem:[%s6063_s16 + $0x30] sm:$0xf] %vm3610_vm15, %v3971_v20  ;;  %v3972_v59 = vpack.c.bf16 %v3543_v60, %v3543_v60 }
 0x266   : > { %3626 = vst.msk [vmem:[%s6063_s16 + $0x3c] sm:$0xf] %vm3610_vm15, %v3974_v11 }
 0x267   : > { %3624 = vst.msk [vmem:[%s6063_s16 + $0x34] sm:$0xf] %vm3610_vm15, %v3972_v59 }
 0x268 PF: > { %s16_s25 = sadd.s32 1, %s4473_s25   ;;  %s6445_s21 = smov %s4465_s23 }
 0x269   : > { %p13_p13 = scmp.ge.s32.totalorder %s16_s25, 6   ;;  %s6446_s22 = smov %s4469_s24 }
 0x26a   : > { %s6447_s23 = smov %s6450_s26  ;;  %s6448_s24 = smov %s6454_s27 }
 0x26b   :  { %15 = sbr.rel (!%p13_p13) target bundleno = 3 (0x3), region = 88 }

</bundles_post_ra>
